<compile_context>
chip_gen: v7x
topology: tpu7x:2x2x1
jax: 0.10.0
libtpu: 0.0.40
codegen_flags: <defaults>
</compile_context>

<pallas_src>
import functools
import math

import jax
import jax.numpy as jnp
from jax.experimental import pallas as pl
from jax.experimental.pallas import tpu as pltpu


def _round_up(x, m):
    return ((x + m - 1) // m) * m


# ----------------------------------------------------------------------------
# Fused kernel: all conv7+ReLU layers + final strided conv for a batch block.
# ----------------------------------------------------------------------------
def _fused_matchnet_kernel(x_ref, mask_ref, w7_ref, b7_ref, wf_ref, bf_ref,
                           o_ref, slab_ref, *,
                           numl, KH, ksz, pad, guard, m_slab, m_out, lanes):
    """
    x_ref   : (1, m_slab, lanes)          bf16  batch-stacked, pre-padded input slab
    mask_ref: (m_slab, lanes)             f32   1 on image-data rows, 0 on pad rows
    w7_ref  : (numl, KH*lanes, lanes)     bf16  tap-fused banded block weights
    b7_ref  : (numl, 1, lanes)            f32   lane-tiled biases
    wf_ref  : (ksz*lanes, out_lanes)      bf16  tap-fused, stride-folded final weights
    bf_ref  : (1, out_lanes)              f32
    o_ref   : (1, m_out, out_lanes)       f32   final conv at every stride-1 row
    slab_ref: (guard+m_slab+guard, lanes) bf16  persistent padded activation slab
    """
    z = jnp.zeros((guard, lanes), jnp.bfloat16)
    slab_ref[0:guard, :] = z                                   # top halo (zeros)
    slab_ref[guard + m_slab:guard + m_slab + guard, :] = z     # bottom halo (zeros)
    slab_ref[guard:guard + m_slab, :] = x_ref[0]               # interior pad rows already 0

    mask = mask_ref[...]                                       # (m_slab, lanes) f32

    # ---- numl x [conv7 "same" + bias + ReLU]: one deep-K matmul per layer ----
    for l in range(numl):
        lhs = jnp.concatenate(
            [slab_ref[guard - pad + kh:guard - pad + kh + m_slab, :]
             for kh in range(KH)], axis=1)                     # (m_slab, KH*lanes) bf16
        acc = jnp.dot(lhs, w7_ref[l], preferred_element_type=jnp.float32)
        # bias + ReLU in f32; mask re-zeroes the pad rows so the next layer's
        # "same" padding reads exact zeros.  Single bf16 cast per layer.
        act = jnp.maximum(acc + b7_ref[l], 0.0) * mask
        slab_ref[guard:guard + m_slab, :] = act.astype(jnp.bfloat16)

    # ---- final conv (ksz taps, stride folded into wf): one deep-K matmul ----
    # evaluated at every stride-1 row; wrapper keeps only the valid strided rows.
    lhs_f = jnp.concatenate(
        [slab_ref[guard + kh:guard + kh + m_out, :] for kh in range(ksz)],
        axis=1)                                                # (m_out, ksz*lanes) bf16
    outf = jnp.dot(lhs_f, wf_ref[...], preferred_element_type=jnp.float32)
    o_ref[0] = (outf + bf_ref[...]).astype(o_ref.dtype)


# ----------------------------------------------------------------------------
# Wrapper-side weight packing (pure JAX, runs once outside the kernel)
# ----------------------------------------------------------------------------
def _pack_conv7_weights(w, b, W, NC):
    """HWIO (KH,KW,Cin,NC) -> (KH, W*NC, W*NC) banded block matrices + lane-tiled bias.

    M_kh[wi*NC+ci, w*NC+co] = w[kh, kw, ci, co] where wi = w + kw - pad (else 0), so a
    single matmul per kh contracts over the horizontal tap kw and ci with horizontal
    zero padding handled implicitly.
    """
    KH, KW, Cin, Cout = w.shape
    if Cin < NC:                                   # layer 0: pad Cin -> NC with zeros
        w = jnp.pad(w, ((0, 0), (0, 0), (0, NC - Cin), (0, 0)))
    pad = (KH - 1) // 2
    mats = []
    for kh in range(KH):
        m = jnp.zeros((W * NC, W * NC), w.dtype)
        for kw in range(KW):
            m = m + jnp.kron(jnp.eye(W, W, k=pad - kw, dtype=w.dtype), w[kh, kw])
        mats.append(m)
    return jnp.stack(mats, 0), jnp.tile(b, W)


def _pack_final_weights(wf, bf, W, Wo, NC, stride):
    """HWIO (K,K,NC,NC) -> (K, W*NC, Wo*NC) banded block matrices (stride folded in)."""
    K = wf.shape[0]
    wi = jnp.arange(W)
    ow = jnp.arange(Wo)
    mats = []
    for kh in range(K):
        m = jnp.zeros((W * NC, Wo * NC), wf.dtype)
        for kw in range(K):
            sel = (wi[:, None] == stride * ow[None, :] + kw).astype(wf.dtype)
            m = m + jnp.kron(sel, wf[kh, kw])
        mats.append(m)
    return jnp.stack(mats, 0), jnp.tile(bf, Wo)


# ----------------------------------------------------------------------------
# Public forward (matches MatchNet.forward semantics, NCHW in / NCHW out)
# ----------------------------------------------------------------------------
def matchnet_forward(im_nchw, params, stride=4, images_per_step=None):
    N, Cin0, H, W = im_nchw.shape
    numl = len(params["layers"])
    KH = params["layers"][0][0].shape[0]
    NC = params["layers"][0][0].shape[-1]
    wf, bf = params["final"]
    ksz = wf.shape[0]
    pad = (KH - 1) // 2
    Ho = (H - ksz) // stride + 1
    Wo = (W - ksz) // stride + 1
    lanes = W * NC
    WoNC = Wo * NC
    out_lanes = _round_up(WoNC, 128)      # lane-pad final output -> unmasked stores

    # Batch-stacking geometry: each grid step processes B images stacked along the
    # sublane (M) axis, with zero rows doubling as vertical "same" padding.
    B = N if images_per_step is None else max(1, min(images_per_step, N))
    num_blocks = -(-N // B)               # on v7x use images_per_step=ceil(N/2)
    Npad = num_blocks * B
    PITCH = _round_up(H + 2 * pad, 8)     # rows per image inside the slab
    GUARD = 16                            # halo rows (bf16 sublane-tile aligned)
    m_slab = B * PITCH
    m_out = _round_up(m_slab - ksz + 1, 8)
    assert pad <= GUARD and ksz <= H and (m_out + ksz - 1) <= m_slab + GUARD

    # ---- lane-packed, batch-stacked, pre-padded input slab (bf16) ----
    x = jnp.transpose(im_nchw, (0, 2, 3, 1))                        # NHWC
    x = jnp.pad(x, ((0, Npad - N), (0, 0), (0, 0), (0, NC - Cin0)))
    x = x.reshape(Npad, H, lanes)
    x = jnp.pad(x, ((0, 0), (pad, PITCH - H - pad), (0, 0)))        # vertical pad rows
    x = x.reshape(num_blocks, m_slab, lanes).astype(jnp.bfloat16)

    # Row mask: 1 on image-data rows, 0 on the shared zero pad rows between images.
    r = jnp.arange(PITCH)
    mrow = ((r >= pad) & (r < pad + H)).astype(jnp.float32)
    mask = jnp.tile(mrow[:, None], (B, lanes))                      # (m_slab, lanes)

    # ---- banded block weights, tap-fused along K, shipped as bf16 ----
    w7_list, b7_list = [], []
    for w, b in params["layers"]:
        wm, bl = _pack_conv7_weights(w, b, W, NC)                   # (KH, lanes, lanes)
        w7_list.append(wm.reshape(KH * lanes, lanes))
        b7_list.append(bl)
    W7 = jnp.stack(w7_list, 0).astype(jnp.bfloat16)                 # (numl, KH*lanes, lanes)
    B7 = jnp.stack(b7_list, 0).reshape(numl, 1, lanes).astype(jnp.float32)

    WF, BF = _pack_final_weights(wf, bf, W, Wo, NC, stride)         # (ksz, lanes, WoNC)
    WF = jnp.pad(WF.reshape(ksz * lanes, WoNC),
                 ((0, 0), (0, out_lanes - WoNC))).astype(jnp.bfloat16)
    BF = jnp.pad(BF, (0, out_lanes - WoNC)).reshape(1, out_lanes).astype(jnp.float32)

    kernel = functools.partial(
        _fused_matchnet_kernel, numl=numl, KH=KH, ksz=ksz, pad=pad, guard=GUARD,
        m_slab=m_slab, m_out=m_out, lanes=lanes)

    out_k = pl.pallas_call(
        kernel,
        out_shape=jax.ShapeDtypeStruct((num_blocks, m_out, out_lanes), jnp.float32),
        grid=(num_blocks,),
        in_specs=[
            pl.BlockSpec((1, m_slab, lanes), lambda g: (g, 0, 0)),
            pl.BlockSpec((m_slab, lanes), lambda g: (0, 0)),
            pl.BlockSpec((numl, KH * lanes, lanes), lambda g: (0, 0, 0)),
            pl.BlockSpec((numl, 1, lanes), lambda g: (0, 0, 0)),
            pl.BlockSpec((ksz * lanes, out_lanes), lambda g: (0, 0)),
            pl.BlockSpec((1, out_lanes), lambda g: (0, 0)),
        ],
        out_specs=pl.BlockSpec((1, m_out, out_lanes), lambda g: (g, 0, 0)),
        scratch_shapes=[pltpu.VMEM((GUARD + m_slab + GUARD, lanes), jnp.bfloat16)],
        compiler_params=pltpu.CompilerParams(
            dimension_semantics=("parallel",)),    # batch blocks across v7x's 2 TCs
    )(x, mask, W7, B7, WF, BF)

    # Keep only the strided/valid output rows and real output lanes (layout plumbing).
    rows = (jnp.arange(B)[:, None] * PITCH + pad
            + jnp.arange(Ho)[None, :] * stride)                     # (B, Ho)
    sel = out_k[:, rows, :WoNC]                                     # (blocks, B, Ho, WoNC)
    out = sel.reshape(Npad, Ho, Wo, NC)[:N]
    return jnp.transpose(out, (0, 3, 1, 2))                         # -> NCHW


# ----------------------------------------------------------------------------
# Deterministic parameter init (mirrors PyTorch Conv2d default fan-in uniform)
# ----------------------------------------------------------------------------
def init_params(key, nc, numl, ksz):
    params = {"layers": [], "final": None}
    cin = 3
    for _ in range(numl):
        key, k1, k2 = jax.random.split(key, 3)
        bound = 1.0 / math.sqrt(cin * 7 * 7)
        w = jax.random.uniform(k1, (7, 7, cin, nc), jnp.float32, -bound, bound)
        b = jax.random.uniform(k2, (nc,), jnp.float32, -bound, bound)
        params["layers"].append((w, b))
        cin = nc
    key, k1, k2 = jax.random.split(key, 3)
    bound = 1.0 / math.sqrt(nc * ksz * ksz)
    wf = jax.random.uniform(k1, (ksz, ksz, nc, nc), jnp.float32, -bound, bound)
    bf = jax.random.uniform(k2, (nc,), jnp.float32, -bound, bound)
    params["final"] = (wf, bf)
    return params


# ----------------------------------------------------------------------------
# Pure-JAX reference (XLA convs, original HWIO weights) for a correctness check
# ----------------------------------------------------------------------------
def reference_forward(im_nchw, params, stride=4):
    x = jnp.transpose(im_nchw, (0, 2, 3, 1))
    for w, b in params["layers"]:
        x = jax.lax.conv_general_dilated(
            x, w, window_strides=(1, 1), padding=[(3, 3), (3, 3)],
            dimension_numbers=("NHWC", "HWIO", "NHWC")) + b
        x = jnp.maximum(x, 0.0)
    wf, bf = params["final"]
    x = jax.lax.conv_general_dilated(
        x, wf, window_strides=(stride, stride), padding="VALID",
        dimension_numbers=("NHWC", "HWIO", "NHWC")) + bf
    return jnp.transpose(x, (0, 3, 1, 2))


# ----------------------------------------------------------------------------
if __name__ == "__main__":
    # Small shapes consistent with MatchNet(nc, numl, ksz).
    NC, NUML, KSZ, STRIDE = 8, 2, 8, 4
    N, H, W = 2, 16, 16

    key = jax.random.PRNGKey(0)
    kp, kx = jax.random.split(key)
    params = init_params(kp, NC, NUML, KSZ)
    im = jax.random.normal(kx, (N, 3, H, W), jnp.float32)

    out = matchnet_forward(im, params, stride=STRIDE)
    out = jax.block_until_ready(out)

    Ho = (H - KSZ) // STRIDE + 1
    assert out.shape == (N, NC, Ho, Ho), out.shape

    # bf16 matmul operands (image + weights) -> loosened tolerance vs f32 reference.
    ref = jax.block_until_ready(reference_forward(im, params, stride=STRIDE))
    assert bool(jnp.allclose(out, ref, atol=3e-2, rtol=3e-2)), (
        float(jnp.max(jnp.abs(out - ref)))
    )

    print("KERNEL_OK")
</pallas_src>

<mosaic_0001>
module attributes {stable_mosaic.version = 11 : i64} {
  func.func @_fused_matchnet_kernel(%arg0: i32, %arg1: memref<1x48x128xbf16, #tpu.memory_space<vmem>>, %arg2: memref<48x128xf32, #tpu.memory_space<vmem>>, %arg3: memref<2x896x128xbf16, #tpu.memory_space<vmem>>, %arg4: memref<2x1x128xf32, #tpu.memory_space<vmem>>, %arg5: memref<1024x128xbf16, #tpu.memory_space<vmem>>, %arg6: memref<1x128xf32, #tpu.memory_space<vmem>>, %arg7: memref<1x48x128xf32, #tpu.memory_space<vmem>>, %arg8: memref<80x128xbf16, #tpu.memory_space<vmem>>) attributes {dimension_semantics = [#tpu.dimension_semantics<parallel>], iteration_bounds = array<i64: 1>, scalar_prefetch = 0 : i64, scratch_operands = 1 : i64, tpu.core_type = #tpu.core_type<tc>, window_params = [{transform_indices = @transform_0, window_bounds = array<i64: 1, 48, 128>}, {pipeline_mode = #tpu.pipeline_mode<synchronous>, transform_indices = @transform_1, window_bounds = array<i64: 48, 128>}, {pipeline_mode = #tpu.pipeline_mode<synchronous>, transform_indices = @transform_2, window_bounds = array<i64: 2, 896, 128>}, {pipeline_mode = #tpu.pipeline_mode<synchronous>, transform_indices = @transform_3, window_bounds = array<i64: 2, 1, 128>}, {pipeline_mode = #tpu.pipeline_mode<synchronous>, transform_indices = @transform_4, window_bounds = array<i64: 1024, 128>}, {pipeline_mode = #tpu.pipeline_mode<synchronous>, transform_indices = @transform_5, window_bounds = array<i64: 1, 128>}, {transform_indices = @transform_6, window_bounds = array<i64: 1, 48, 128>}]} {
    %cst = arith.constant 0.000000e+00 : bf16
    %0 = vector.broadcast %cst : bf16 to vector<16x128xbf16>
    %c0 = arith.constant 0 : index
    %c0_0 = arith.constant 0 : index
    %1 = vector.load %arg8[%c0, %c0_0] : memref<80x128xbf16, #tpu.memory_space<vmem>>, vector<16x128xbf16>
    tpu.vector_store %arg8[%c0, %c0_0], %0 {strides = array<i32>} : memref<80x128xbf16, #tpu.memory_space<vmem>>, vector<16x128xbf16>,
    %c64 = arith.constant 64 : index
    %c0_1 = arith.constant 0 : index
    %2 = vector.load %arg8[%c64, %c0_1] : memref<80x128xbf16, #tpu.memory_space<vmem>>, vector<16x128xbf16>
    tpu.vector_store %arg8[%c64, %c0_1], %0 {strides = array<i32>} : memref<80x128xbf16, #tpu.memory_space<vmem>>, vector<16x128xbf16>,
    %c0_2 = arith.constant 0 : index
    %c0_3 = arith.constant 0 : index
    %c0_4 = arith.constant 0 : index
    %3 = vector.load %arg1[%c0_2, %c0_3, %c0_4] : memref<1x48x128xbf16, #tpu.memory_space<vmem>>, vector<1x48x128xbf16>
    %4 = vector.shape_cast %3 : vector<1x48x128xbf16> to vector<48x128xbf16>
    %c16 = arith.constant 16 : index
    %c0_5 = arith.constant 0 : index
    %5 = vector.load %arg8[%c16, %c0_5] : memref<80x128xbf16, #tpu.memory_space<vmem>>, vector<48x128xbf16>
    tpu.vector_store %arg8[%c16, %c0_5], %4 {strides = array<i32>} : memref<80x128xbf16, #tpu.memory_space<vmem>>, vector<48x128xbf16>,
    %c0_6 = arith.constant 0 : index
    %c0_7 = arith.constant 0 : index
    %6 = vector.load %arg2[%c0_6, %c0_7] : memref<48x128xf32, #tpu.memory_space<vmem>>, vector<48x128xf32>
    %c13 = arith.constant 13 : index
    %c0_8 = arith.constant 0 : index
    %7 = vector.load %arg8[%c13, %c0_8] : memref<80x128xbf16, #tpu.memory_space<vmem>>, vector<48x128xbf16>
    %c14 = arith.constant 14 : index
    %c0_9 = arith.constant 0 : index
    %8 = vector.load %arg8[%c14, %c0_9] : memref<80x128xbf16, #tpu.memory_space<vmem>>, vector<48x128xbf16>
    %c15 = arith.constant 15 : index
    %c0_10 = arith.constant 0 : index
    %9 = vector.load %arg8[%c15, %c0_10] : memref<80x128xbf16, #tpu.memory_space<vmem>>, vector<48x128xbf16>
    %c16_11 = arith.constant 16 : index
    %c0_12 = arith.constant 0 : index
    %10 = vector.load %arg8[%c16_11, %c0_12] : memref<80x128xbf16, #tpu.memory_space<vmem>>, vector<48x128xbf16>
    %c17 = arith.constant 17 : index
    %c0_13 = arith.constant 0 : index
    %11 = vector.load %arg8[%c17, %c0_13] : memref<80x128xbf16, #tpu.memory_space<vmem>>, vector<48x128xbf16>
    %c18 = arith.constant 18 : index
    %c0_14 = arith.constant 0 : index
    %12 = vector.load %arg8[%c18, %c0_14] : memref<80x128xbf16, #tpu.memory_space<vmem>>, vector<48x128xbf16>
    %c19 = arith.constant 19 : index
    %c0_15 = arith.constant 0 : index
    %13 = vector.load %arg8[%c19, %c0_15] : memref<80x128xbf16, #tpu.memory_space<vmem>>, vector<48x128xbf16>
    %14 = tpu.concatenate %7, %8, %9, %10, %11, %12, %13 in 1 : vector<48x128xbf16>, vector<48x128xbf16>, vector<48x128xbf16>, vector<48x128xbf16>, vector<48x128xbf16>, vector<48x128xbf16>, vector<48x128xbf16> -> vector<48x896xbf16>
    %c0_16 = arith.constant 0 : index
    %c0_17 = arith.constant 0 : index
    %c0_18 = arith.constant 0 : index
    %15 = vector.load %arg3[%c0_16, %c0_17, %c0_18] : memref<2x896x128xbf16, #tpu.memory_space<vmem>>, vector<1x896x128xbf16>
    %16 = vector.shape_cast %15 : vector<1x896x128xbf16> to vector<896x128xbf16>
    %cst_19 = arith.constant dense<0.000000e+00> : vector<48x128xf32>
    %17 = tpu.matmul %14, %16, %cst_19 {dimension_numbers = #tpu.dot_dimension_numbers<[1], [0], [0], [1], [0, 0, 1, 1], [], []>} : vector<48x896xbf16>, vector<896x128xbf16>, vector<48x128xf32> -> vector<48x128xf32>
    %c0_20 = arith.constant 0 : index
    %c0_21 = arith.constant 0 : index
    %c0_22 = arith.constant 0 : index
    %18 = vector.load %arg4[%c0_20, %c0_21, %c0_22] : memref<2x1x128xf32, #tpu.memory_space<vmem>>, vector<1x1x128xf32>
    %19 = vector.shape_cast %18 : vector<1x1x128xf32> to vector<1x128xf32>
    %20 = vector.broadcast %19 : vector<1x128xf32> to vector<48x128xf32>
    %21 = arith.addf %17, %20 : vector<48x128xf32>
    %cst_23 = arith.constant 0.000000e+00 : f32
    %22 = vector.broadcast %cst_23 : f32 to vector<48x128xf32>
    %23 = arith.maximumf %21, %22 : vector<48x128xf32>
    %24 = arith.mulf %23, %6 : vector<48x128xf32>
    %25 = arith.truncf %24 : vector<48x128xf32> to vector<48x128xbf16>
    %c16_24 = arith.constant 16 : index
    %c0_25 = arith.constant 0 : index
    %26 = vector.load %arg8[%c16_24, %c0_25] : memref<80x128xbf16, #tpu.memory_space<vmem>>, vector<48x128xbf16>
    tpu.vector_store %arg8[%c16_24, %c0_25], %25 {strides = array<i32>} : memref<80x128xbf16, #tpu.memory_space<vmem>>, vector<48x128xbf16>,
    %c13_26 = arith.constant 13 : index
    %c0_27 = arith.constant 0 : index
    %27 = vector.load %arg8[%c13_26, %c0_27] : memref<80x128xbf16, #tpu.memory_space<vmem>>, vector<48x128xbf16>
    %c14_28 = arith.constant 14 : index
    %c0_29 = arith.constant 0 : index
    %28 = vector.load %arg8[%c14_28, %c0_29] : memref<80x128xbf16, #tpu.memory_space<vmem>>, vector<48x128xbf16>
    %c15_30 = arith.constant 15 : index
    %c0_31 = arith.constant 0 : index
    %29 = vector.load %arg8[%c15_30, %c0_31] : memref<80x128xbf16, #tpu.memory_space<vmem>>, vector<48x128xbf16>
    %c16_32 = arith.constant 16 : index
    %c0_33 = arith.constant 0 : index
    %30 = vector.load %arg8[%c16_32, %c0_33] : memref<80x128xbf16, #tpu.memory_space<vmem>>, vector<48x128xbf16>
    %c17_34 = arith.constant 17 : index
    %c0_35 = arith.constant 0 : index
    %31 = vector.load %arg8[%c17_34, %c0_35] : memref<80x128xbf16, #tpu.memory_space<vmem>>, vector<48x128xbf16>
    %c18_36 = arith.constant 18 : index
    %c0_37 = arith.constant 0 : index
    %32 = vector.load %arg8[%c18_36, %c0_37] : memref<80x128xbf16, #tpu.memory_space<vmem>>, vector<48x128xbf16>
    %c19_38 = arith.constant 19 : index
    %c0_39 = arith.constant 0 : index
    %33 = vector.load %arg8[%c19_38, %c0_39] : memref<80x128xbf16, #tpu.memory_space<vmem>>, vector<48x128xbf16>
    %34 = tpu.concatenate %27, %28, %29, %30, %31, %32, %33 in 1 : vector<48x128xbf16>, vector<48x128xbf16>, vector<48x128xbf16>, vector<48x128xbf16>, vector<48x128xbf16>, vector<48x128xbf16>, vector<48x128xbf16> -> vector<48x896xbf16>
    %c1 = arith.constant 1 : index
    %c0_40 = arith.constant 0 : index
    %c0_41 = arith.constant 0 : index
    %35 = vector.load %arg3[%c1, %c0_40, %c0_41] : memref<2x896x128xbf16, #tpu.memory_space<vmem>>, vector<1x896x128xbf16>
    %36 = vector.shape_cast %35 : vector<1x896x128xbf16> to vector<896x128xbf16>
    %cst_42 = arith.constant dense<0.000000e+00> : vector<48x128xf32>
    %37 = tpu.matmul %34, %36, %cst_42 {dimension_numbers = #tpu.dot_dimension_numbers<[1], [0], [0], [1], [0, 0, 1, 1], [], []>} : vector<48x896xbf16>, vector<896x128xbf16>, vector<48x128xf32> -> vector<48x128xf32>
    %c1_43 = arith.constant 1 : index
    %c0_44 = arith.constant 0 : index
    %c0_45 = arith.constant 0 : index
    %38 = vector.load %arg4[%c1_43, %c0_44, %c0_45] : memref<2x1x128xf32, #tpu.memory_space<vmem>>, vector<1x1x128xf32>
    %39 = vector.shape_cast %38 : vector<1x1x128xf32> to vector<1x128xf32>
    %40 = vector.broadcast %39 : vector<1x128xf32> to vector<48x128xf32>
    %41 = arith.addf %37, %40 : vector<48x128xf32>
    %cst_46 = arith.constant 0.000000e+00 : f32
    %42 = vector.broadcast %cst_46 : f32 to vector<48x128xf32>
    %43 = arith.maximumf %41, %42 : vector<48x128xf32>
    %44 = arith.mulf %43, %6 : vector<48x128xf32>
    %45 = arith.truncf %44 : vector<48x128xf32> to vector<48x128xbf16>
    %c16_47 = arith.constant 16 : index
    %c0_48 = arith.constant 0 : index
    %46 = vector.load %arg8[%c16_47, %c0_48] : memref<80x128xbf16, #tpu.memory_space<vmem>>, vector<48x128xbf16>
    tpu.vector_store %arg8[%c16_47, %c0_48], %45 {strides = array<i32>} : memref<80x128xbf16, #tpu.memory_space<vmem>>, vector<48x128xbf16>,
    %c16_49 = arith.constant 16 : index
    %c0_50 = arith.constant 0 : index
    %47 = vector.load %arg8[%c16_49, %c0_50] : memref<80x128xbf16, #tpu.memory_space<vmem>>, vector<48x128xbf16>
    %c17_51 = arith.constant 17 : index
    %c0_52 = arith.constant 0 : index
    %48 = vector.load %arg8[%c17_51, %c0_52] : memref<80x128xbf16, #tpu.memory_space<vmem>>, vector<48x128xbf16>
    %c18_53 = arith.constant 18 : index
    %c0_54 = arith.constant 0 : index
    %49 = vector.load %arg8[%c18_53, %c0_54] : memref<80x128xbf16, #tpu.memory_space<vmem>>, vector<48x128xbf16>
    %c19_55 = arith.constant 19 : index
    %c0_56 = arith.constant 0 : index
    %50 = vector.load %arg8[%c19_55, %c0_56] : memref<80x128xbf16, #tpu.memory_space<vmem>>, vector<48x128xbf16>
    %c20 = arith.constant 20 : index
    %c0_57 = arith.constant 0 : index
    %51 = vector.load %arg8[%c20, %c0_57] : memref<80x128xbf16, #tpu.memory_space<vmem>>, vector<48x128xbf16>
    %c21 = arith.constant 21 : index
    %c0_58 = arith.constant 0 : index
    %52 = vector.load %arg8[%c21, %c0_58] : memref<80x128xbf16, #tpu.memory_space<vmem>>, vector<48x128xbf16>
    %c22 = arith.constant 22 : index
    %c0_59 = arith.constant 0 : index
    %53 = vector.load %arg8[%c22, %c0_59] : memref<80x128xbf16, #tpu.memory_space<vmem>>, vector<48x128xbf16>
    %c23 = arith.constant 23 : index
    %c0_60 = arith.constant 0 : index
    %54 = vector.load %arg8[%c23, %c0_60] : memref<80x128xbf16, #tpu.memory_space<vmem>>, vector<48x128xbf16>
    %55 = tpu.concatenate %47, %48, %49, %50, %51, %52, %53, %54 in 1 : vector<48x128xbf16>, vector<48x128xbf16>, vector<48x128xbf16>, vector<48x128xbf16>, vector<48x128xbf16>, vector<48x128xbf16>, vector<48x128xbf16>, vector<48x128xbf16> -> vector<48x1024xbf16>
    %c0_61 = arith.constant 0 : index
    %c0_62 = arith.constant 0 : index
    %56 = vector.load %arg5[%c0_61, %c0_62] : memref<1024x128xbf16, #tpu.memory_space<vmem>>, vector<1024x128xbf16>
    %cst_63 = arith.constant dense<0.000000e+00> : vector<48x128xf32>
    %57 = tpu.matmul %55, %56, %cst_63 {dimension_numbers = #tpu.dot_dimension_numbers<[1], [0], [0], [1], [0, 0, 1, 1], [], []>} : vector<48x1024xbf16>, vector<1024x128xbf16>, vector<48x128xf32> -> vector<48x128xf32>
    %c0_64 = arith.constant 0 : index
    %c0_65 = arith.constant 0 : index
    %58 = vector.load %arg6[%c0_64, %c0_65] : memref<1x128xf32, #tpu.memory_space<vmem>>, vector<1x128xf32>
    %59 = vector.broadcast %58 : vector<1x128xf32> to vector<48x128xf32>
    %60 = arith.addf %57, %59 : vector<48x128xf32>
    %c0_66 = arith.constant 0 : index
    %c0_67 = arith.constant 0 : index
    %c0_68 = arith.constant 0 : index
    %61 = vector.load %arg7[%c0_66, %c0_67, %c0_68] : memref<1x48x128xf32, #tpu.memory_space<vmem>>, vector<1x48x128xf32>
    %62 = vector.shape_cast %61 : vector<1x48x128xf32> to vector<48x128xf32>
    %63 = vector.shape_cast %60 : vector<48x128xf32> to vector<1x48x128xf32>
    tpu.vector_store %arg7[%c0_66, %c0_67, %c0_68], %63 {strides = array<i32>} : memref<1x48x128xf32, #tpu.memory_space<vmem>>, vector<1x48x128xf32>,
    return
  }
  func.func @transform_0(%arg0: i32) -> (i32, i32, i32) {
    %c0_i32 = arith.constant 0 : i32
    %c0_i32_0 = arith.constant 0 : i32
    %c0_i32_1 = arith.constant 0 : i32
    return %arg0, %c0_i32, %c0_i32_0 : i32, i32, i32
  }
  func.func @transform_1(%arg0: i32) -> (i32, i32) {
    %c0_i32 = arith.constant 0 : i32
    %c0_i32_0 = arith.constant 0 : i32
    %c0_i32_1 = arith.constant 0 : i32
    return %c0_i32, %c0_i32_0 : i32, i32
  }
  func.func @transform_2(%arg0: i32) -> (i32, i32, i32) {
    %c0_i32 = arith.constant 0 : i32
    %c0_i32_0 = arith.constant 0 : i32
    %c0_i32_1 = arith.constant 0 : i32
    %c0_i32_2 = arith.constant 0 : i32
    return %c0_i32, %c0_i32_0, %c0_i32_1 : i32, i32, i32
  }
  func.func @transform_3(%arg0: i32) -> (i32, i32, i32) {
    %c0_i32 = arith.constant 0 : i32
    %c0_i32_0 = arith.constant 0 : i32
    %c0_i32_1 = arith.constant 0 : i32
    %c0_i32_2 = arith.constant 0 : i32
    return %c0_i32, %c0_i32_0, %c0_i32_1 : i32, i32, i32
  }
  func.func @transform_4(%arg0: i32) -> (i32, i32) {
    %c0_i32 = arith.constant 0 : i32
    %c0_i32_0 = arith.constant 0 : i32
    %c0_i32_1 = arith.constant 0 : i32
    return %c0_i32, %c0_i32_0 : i32, i32
  }
  func.func @transform_5(%arg0: i32) -> (i32, i32) {
    %c0_i32 = arith.constant 0 : i32
    %c0_i32_0 = arith.constant 0 : i32
    %c0_i32_1 = arith.constant 0 : i32
    return %c0_i32, %c0_i32_0 : i32, i32
  }
  func.func @transform_6(%arg0: i32) -> (i32, i32, i32) {
    %c0_i32 = arith.constant 0 : i32
    %c0_i32_0 = arith.constant 0 : i32
    %c0_i32_1 = arith.constant 0 : i32
    return %arg0, %c0_i32, %c0_i32_0 : i32, i32, i32
  }
}

</mosaic_0001>

<bundles_post_ra>
// kernel: tpu_custom_call.1
= control target key start
LH: loop header
LB: loop body
LE: loop exit
PB: predicated region body
PF: predicated region fallthrough
CT: control target
= control target key end

     0   :  { %11 = vsyncpa [#allocation4], 0  ;;  %s4750_s0 = inlined_call_operand.hbm [shape: bf16[1,48,128], index: 0, kind: input, shape index: {}]   ;;  %s4751_s1 = inlined_call_operand.hbm [shape: f32[48,128], index: 1, kind: input, shape index: {}]   ;;  %s4752_s2 = inlined_call_operand.hbm [shape: bf16[2,896,128], index: 2, kind: input, shape index: {}]   ;;  %s4753_s3 = inlined_call_operand.vmem [shape: f32[2,1,128], index: 3, kind: input, shape index: {}]   ;;  %s4754_s4 = inlined_call_operand.hbm [shape: bf16[1024,128], index: 4, kind: input, shape index: {}]   ;;  %s4755_s5 = inlined_call_operand.vmem [shape: f32[1,128], index: 5, kind: input, shape index: {}]   ;;  %s4756_s6 = inlined_call_operand.hbm [shape: f32[1,48,128], index: 6, kind: output, shape index: {}]  }
   0x1   :  { %12 = vsyncpa [#allocation7], 0 }
   0x2   :  { %13 = vsyncpa [#allocation10], 0 }
   0x3   :  { %14 = vsyncpa [#allocation5], 0  ;;  %s4127_s21 = smov [#allocation6]   ;;  %s4009_s25 = scalar_lea.hbm %s4751_s1, 768 }
   0x4   :  { %s32_s22 = sshll.u32 %s4127_s21, 4  ;;  %p4010_p0 = scmp.ne.s32.totalorder %s4751_s1, %s4009_s25  ;;  %s33_s22 = int_to_ptr.vmem [resolvable:$true] %s32_s22 }
   0x5   :  { %p4013_p1 = scmp.lt.u32.totalorder %s4009_s25, %s4751_s1 }
   0x7   :  { %p4015_p2 = pnand %p4013_p1, %p4010_p0 }
   0x9   :  { %4018 = shalt.err (!%p4015_p2)
}
   0xa   :  { %s4019_s30 = scalar_lea.vmem %s33_s22, 768  ;;  %p4024_p4 = scmp.lt.s32.totalorder %s33_s22, %s33_s22 }
   0xb   :  { %p4020_p3 = scmp.ne.s32.totalorder %s33_s22, %s4019_s30  ;;  %p4025_p5 = scmp.lt.s32.totalorder %s4019_s30, %s4019_s30 }
   0xd   :  { %p4026_p6 = por %p4025_p5, %p4024_p4 }
   0xf   :  { %p4027_p7 = pnand %p4026_p6, %p4020_p3 }
  0x11   :  { %4030 = shalt.err (!%p4027_p7)
}
  0x12   :  { %s4128_s7 = smov 128   ;;  %s4129_s8 = smov 8  }
  0x13   :  { %38 = dma.hbm_to_vmem [thread:$0]  %s4751_s1, 768, %s33_s22, [#allocation7], %s4128_s7, %s4128_s7, %s4129_s8  }
  0x14   :  { %s4130_s11 = smov [#allocation3]   ;;  %s4031_s15 = scalar_lea.hbm %s4750_s0, 384 }
  0x15   :  { %s20_s12 = sshll.u32 %s4130_s11, 4  ;;  %p4032_p8 = scmp.ne.s32.totalorder %s4750_s0, %s4031_s15  ;;  %s21_s12 = int_to_ptr.vmem [resolvable:$true] %s20_s12 }
  0x16   :  { %p4035_p9 = scmp.lt.u32.totalorder %s4031_s15, %s4750_s0 }
  0x18   :  { %p4037_p10 = pnand %p4035_p9, %p4032_p8 }
  0x1a   :  { %4040 = shalt.err (!%p4037_p10)
}
  0x1b   :  { %s4041_s20 = scalar_lea.vmem %s21_s12, 384  ;;  %p4046_p12 = scmp.lt.s32.totalorder %s21_s12, %s21_s12 }
  0x1c   :  { %p4042_p11 = scmp.ne.s32.totalorder %s21_s12, %s4041_s20  ;;  %p4047_p13 = scmp.lt.s32.totalorder %s4041_s20, %s4041_s20 }
  0x1e   :  { %p4048_p0 = por %p4047_p13, %p4046_p12 }
  0x20   :  { %p4049_p1 = pnand %p4048_p0, %p4042_p11 }
  0x22   :  { %4052 = shalt.err (!%p4049_p1)
}
  0x23   :  { %s4131_s1 = smov 64   ;;  %s4132_s21 = smov 4  }
  0x24   :  { %26 = dma.hbm_to_vmem [thread:$0]  %s4750_s0, 384, %s21_s12, [#allocation4], %s4131_s1, %s4131_s1, %s4132_s21  }
  0x25   :  { %s4133_s24 = smov [#allocation8]   ;;  %s4134_s26 = smov [#allocation9]  }
  0x26   :  { %s44_s25 = sshll.u32 %s4133_s24, 4  ;;  %s58_s27 = sshll.u32 %s4134_s26, 4  ;;  %s45_s25 = int_to_ptr.vmem [resolvable:$true] %s44_s25  ;;  %s4204_s27 = int_to_ptr.vmem [resolvable:$true] %s58_s27 }
  0x27   :  { %s4053_s30 = scalar_lea.hbm %s4752_s2, 14336 }
  0x28   :  { %p4054_p2 = scmp.ne.s32.totalorder %s4752_s2, %s4053_s30  ;;  %p4057_p3 = scmp.lt.u32.totalorder %s4053_s30, %s4752_s2 }
  0x2a   :  { %p4059_p4 = pnand %p4057_p3, %p4054_p2 }
  0x2c   :  { %4062 = shalt.err (!%p4059_p4)
}
  0x2d   :  { %s4063_s0 = scalar_lea.vmem %s45_s25, 14336  ;;  %p4068_p6 = scmp.lt.s32.totalorder %s45_s25, %s45_s25 }
  0x2e   :  { %p4064_p5 = scmp.ne.s32.totalorder %s45_s25, %s4063_s0  ;;  %p4069_p7 = scmp.lt.s32.totalorder %s4063_s0, %s4063_s0 }
  0x30   :  { %p4070_p8 = por %p4069_p7, %p4068_p6 }
  0x32   :  { %p4071_p9 = pnand %p4070_p8, %p4064_p5 }
  0x34   :  { %4074 = shalt.err (!%p4071_p9)
}
  0x35   :  { %50 = dma.hbm_to_vmem [thread:$0]  %s4752_s2, 14336, %s45_s25, [#allocation7], %s4131_s1, %s4131_s1, %s4132_s21  }
  0x36   :  { %s4075_s17 = scalar_lea.hbm %s4754_s4, 8192 }
  0x37   :  { %p4076_p10 = scmp.ne.s32.totalorder %s4754_s4, %s4075_s17  ;;  %p4079_p11 = scmp.lt.u32.totalorder %s4075_s17, %s4754_s4 }
  0x39   :  { %p4081_p12 = pnand %p4079_p11, %p4076_p10 }
  0x3b   :  { %4084 = shalt.err (!%p4081_p12)
}
  0x3c   :  { %s4085_s23 = scalar_lea.vmem %s4204_s27, 8192  ;;  %p4090_p0 = scmp.lt.s32.totalorder %s4204_s27, %s4204_s27 }
  0x3d   :  { %p4086_p13 = scmp.ne.s32.totalorder %s4204_s27, %s4085_s23  ;;  %p4091_p1 = scmp.lt.s32.totalorder %s4085_s23, %s4085_s23 }
  0x3f   :  { %p4092_p2 = por %p4091_p1, %p4090_p0 }
  0x41   :  { %p4093_p3 = pnand %p4092_p2, %p4086_p13 }
  0x43   :  { %4096 = shalt.err (!%p4093_p3)
}
  0x44   :  { %64 = dma.hbm_to_vmem [thread:$0]  %s4754_s4, 8192, %s4204_s27, [#allocation10], %s4131_s1, %s4131_s1, %s4132_s21  }
  0x45   :  { %4119 = dma.done.wait [#allocation4], 384  }
  0x46   :  { %4120 = vsyncadd [#allocation4], 4294966912 }
  0x47   :  { %4121 = dma.done.wait [#allocation7], 15104  }
  0x48   :  { %4122 = vsyncadd [#allocation7], 4294952192 }
  0x49   :  { %4123 = dma.done.wait [#allocation10], 8192  }
  0x4a   :  { %4124 = vsyncadd [#allocation10], 4294959104  ;;  %v4135_v0 = vmov 0   ;;  %v3830_v1 = vld [vmem:[#allocation8 + $0x40] sm:$0xff]   ;;  %v3834_v5 = vld [vmem:[#allocation8 + $0x48] sm:$0xff]   ;;  %vm163_vm3 = vcmask 1046528  }
  0x4b   :  { %80 = vst [vmem:[#allocation2] sm:$0xff] %v4135_v0  ;;  %81 = vst [vmem:[#allocation2 + $0x20] sm:$0xff] %v4135_v0  ;;  %v3831_v2 = vld [vmem:[#allocation8] sm:$0xff]   ;;  %3400 = vmatprep.subr.bf16.mxu0 %v3830_v1  ;;  %v3835_v6 = vld [vmem:[#allocation8 + $0x8] sm:$0xff]   ;;  %vm127_vm0 = vsmask.f32 7424 }
  0x4c   :  { %v3832_v3 = vld [vmem:[#allocation8 + $0xc0] sm:$0xff]   ;;  %3401 = vmatpush3.bf16.msra.mxu0 %v3831_v2  ;;  %v3836_v7 = vld [vmem:[#allocation8 + $0xc8] sm:$0xff]   ;;  %v3838_v9 = vld [vmem:[#allocation8 + $0x50] sm:$0xff]   ;;  %vm365_vm1 = vsmask.f32 1280  ;;  %v4136_v52 = vmov 0.0  }
  0x4d   :  { %v3833_v4 = vld [vmem:[#allocation8 + $0x80] sm:$0xff]   ;;  %3434 = vmatprep.subr.bf16.mxu1 %v3832_v3  ;;  %3402 = vmatprep.subr.bf16.mxu0 %v3834_v5  ;;  %v3837_v8 = vld [vmem:[#allocation8 + $0x88] sm:$0xff]   ;;  %v3839_v10 = vld [vmem:[#allocation8 + $0x10] sm:$0xff]   ;;  %vm171_vm2 = vsmask.f32 6400  ;;  %vm192_vm4 = vcmask 1045504  }
  0x4e   :  { %3435 = vmatpush3.bf16.msra.mxu1 %v3833_v4  ;;  %v3840_v11 = vld [vmem:[#allocation8 + $0xd0] sm:$0xff]   ;;  %v3842_v13 = vld [vmem:[#allocation8 + $0x58] sm:$0xff]   ;;  %v3846_v17 = vld [vmem:[#allocation8 + $0x60] sm:$0xff]   ;;  %vm200_vm5 = vsmask.f32 5376  ;;  %vm238_vm6 = vcmask 1044480  }
  0x4f   :  { %3436 = vmatprep.subr.bf16.mxu1 %v3836_v7  ;;  %v3841_v12 = vld [vmem:[#allocation8 + $0x90] sm:$0xff]   ;;  %v3843_v14 = vld [vmem:[#allocation8 + $0x18] sm:$0xff]   ;;  %v3847_v18 = vld [vmem:[#allocation8 + $0x20] sm:$0xff]   ;;  %vm4137_vm7 = vmmov 0   ;;  %vm2416_vm8 = vsmask.f32 4352 }
  0x50   :  { %3403 = vmatpush3.bf16.msra.mxu0 %v3835_v6  ;;  %v3844_v15 = vld [vmem:[#allocation8 + $0xd8] sm:$0xff]   ;;  %v3848_v19 = vld [vmem:[#allocation8 + $0xe0] sm:$0xff]   ;;  %v3850_v21 = vld [vmem:[#allocation8 + $0x68] sm:$0xff]  }
  0x51   :  { %3404 = vmatprep.subr.bf16.mxu0 %v3838_v9  ;;  %v3845_v16 = vld [vmem:[#allocation8 + $0x98] sm:$0xff]   ;;  %v3849_v20 = vld [vmem:[#allocation8 + $0xa0] sm:$0xff]   ;;  %v3851_v22 = vld [vmem:[#allocation8 + $0x28] sm:$0xff]  }
  0x52   :  { %3437 = vmatpush3.bf16.msra.mxu1 %v3837_v8  ;;  %v3852_v23 = vld [vmem:[#allocation8 + $0xe8] sm:$0xff]   ;;  %v3854_v25 = vld [vmem:[#allocation8 + $0x70] sm:$0xff]   ;;  %v3858_v29 = vld [vmem:[#allocation8 + $0x78] sm:$0xff]  }
  0x53   :  { %3438 = vmatprep.subr.bf16.mxu1 %v3840_v11  ;;  %v3853_v24 = vld [vmem:[#allocation8 + $0xa8] sm:$0xff]   ;;  %v3855_v26 = vld [vmem:[#allocation8 + $0x30] sm:$0xff]   ;;  %v3859_v30 = vld [vmem:[#allocation8 + $0x38] sm:$0xff]  }
  0x54   :  { %3405 = vmatpush3.bf16.msra.mxu0 %v3839_v10  ;;  %v3856_v27 = vld [vmem:[#allocation8 + $0xf0] sm:$0xff]   ;;  %v3860_v31 = vld [vmem:[#allocation8 + $0xf8] sm:$0xff]   ;;  %v4243_v33 = vld [vmem:[#allocation3 + $0x8] sm:$0xff]  }
  0x55   :  { %3406 = vmatprep.subr.bf16.mxu0 %v3842_v13  ;;  %v3857_v28 = vld [vmem:[#allocation8 + $0xb0] sm:$0xff]   ;;  %v4241_v32 = vld [vmem:[#allocation3] sm:$0xff]   ;;  %v3864_v40 = vld [vmem:[#allocation8 + $0x140] sm:$0xff]   ;;  %v4249_v41 = vshll.u32 %v4243_v33, 16  ;;  %v4252_v43 = vshrl.u32 %v4243_v33, 16 }
  0x56   :  { %3439 = vmatpush3.bf16.msra.mxu1 %v3841_v12  ;;  %v119_v34 = vld [vmem:[#allocation2] sm:$0x80]  ;;  %106 = vst [vmem:[#allocation2 + $0x8] sm:$0xff] %v4241_v32  ;;  %v136_v37 = vshll.u32 %v4241_v32, 16  ;;  %v140_v38 = vshrl.u32 %v4241_v32, 16  ;;  %v3863_v39 = vld [vmem:[#allocation8 + $0xb8] sm:$0xff]  }
  0x57   :  { %3440 = vmatprep.subr.bf16.mxu1 %v3844_v15  ;;  %v129_v35 = vshrl.u32 %v119_v34, 16  ;;  %v131_v36 = vshll.u32 %v119_v34, 16  ;;  %v115_v42 = vld [vmem:[#allocation2] sm:$0xc0]  ;;  %v146_v48 = vrot.slane %v4249_v41, 1  ;;  %v175_v59 = vrot.slane %v4252_v43, 1 }
  0x58   :  { %3407 = vmatpush3.bf16.msra.mxu0 %v3843_v14  ;;  %v138_v45 = vrot.slane %v136_v37, 1  ;;  %v367_v46 = vshrl.u32 %v115_v42, 16  ;;  %v370_v47 = vshll.u32 %v115_v42, 16  ;;  %v374_v49 = vrot.slane %v140_v38, 6 }
  0x59   :  { %3408 = vmatprep.subr.bf16.mxu0 %v3846_v17  ;;  %v133_v44 = vrot.slane %v131_v36, 1  ;;  %v375_v50 = vrot.slane %v136_v37, 7  ;;  %v172_v51 = vrot.slane %v140_v38, 1  ;;  %v173_v58 = vrot.slane %v136_v37, 2  ;;  %v3868_v36 = vld [vmem:[#allocation8 + $0x108] sm:$0xff]  }
  0x5a   :  { %3441 = vmatpush3.bf16.msra.mxu1 %v3845_v16  ;;  %v142_v54 = vor.u32 %v140_v38, %v138_v45  ;;  %v369_v55 = vrot.slane %v367_v46, 6  ;;  %v372_v56 = vrot.slane %v370_v47, 7  ;;  %v176_v60 = vrot.slane %v4249_v41, 2  ;;  %v4278_v37 = vld [vmem:[#allocation3 + $0x10] sm:$0xff]  }
  0x5b   :  { %3442 = vmatprep.subr.bf16.mxu1 %v3848_v19  ;;  %v134_v53 = vor.u32 %v133_v44, %v129_v35  ;;  %v4256_v57 = vor.u32 %v375_v50, %v374_v49  ;;  %v164_v0 = vrot.slane %v119_v34, 1  ;;  %v174_v6 = vor.u32 %v173_v58, %v172_v51  ;;  %v3870_v44 = vld [vmem:[#allocation8 + $0x150] sm:$0xff]   ;;  %108 = vst [vmem:[#allocation2 + $0x18] sm:$0xff] %v4278_v37  ;;  %v3866_v50 = vld [vmem:[#allocation8 + $0x180] sm:$0xff]  }
  0x5c   :  { %3409 = vmatpush3.bf16.msra.mxu0 %v3847_v18  ;;  %v147_v62 = vsel %vm127_vm0, %v142_v54, %v146_v48  ;;  %v373_v63 = vor.u32 %v372_v56, %v369_v55  ;;  %v4266_v7 = vor.u32 %v176_v60, %v175_v59  ;;  %v165_v8 = vrot.slane %v4241_v32, 1  ;;  %v3871_v51 = vld [vmem:[#allocation8 + $0x110] sm:$0xff]  }
  0x5d   :  { %3410 = vmatprep.subr.bf16.mxu0 %v3850_v21  ;;  %v139_v61 = vsel %vm127_vm0, %v134_v53, %v138_v45  ;;  %v387_v3 = vshrl.u32 %v147_v62, 16  ;;  %v390_v4 = vshll.u32 %v147_v62, 16  ;;  %v413_v14 = vshrl.u32 %v174_v6, 16  ;;  %v3865_v21 = vld [vmem:[#allocation8 + $0x100] sm:$0xff]  }
  0x5e   :  { %3443 = vmatpush3.bf16.msra.mxu1 %v3849_v20  ;;  %v379_v1 = vshrl.u32 %v139_v61, 16  ;;  %v382_v2 = vshll.u32 %v139_v61, 16  ;;  %v377_v5 = vsel %vm365_vm1, %v373_v63, %v4256_v57  ;;  %v178_v13 = vsel %vm171_vm2, %v174_v6, %v4266_v7  ;;  %v3869_v63 = vld [vmem:[#allocation8 + $0x188] sm:$0xff]  }
  0x5f   :  { %3444 = vmatprep.subr.bf16.mxu1 %v3852_v23  ;;  %v389_v11 = vrot.slane %v387_v3, 6  ;;  %v392_v12 = vrot.slane %v390_v4, 7  ;;  %v416_v15 = vshll.u32 %v174_v6, 16  ;;  %v166_v16 = vsel %vm163_vm3, %v164_v0, %v165_v8  ;;  %v3874_v0 = vld [vmem:[#allocation8 + $0x158] sm:$0xff]  }
  0x60   :  { %3411 = vmatpush3.bf16.msra.mxu0 %v3851_v22  ;;  %v381_v9 = vrot.slane %v379_v1, 6  ;;  %v384_v10 = vrot.slane %v382_v2, 7  ;;  %v421_v19 = vshrl.u32 %v178_v13, 16  ;;  %v424_v20 = vshll.u32 %v178_v13, 16 }
  0x61   :  { %3412 = vmatprep.subr.bf16.mxu0 %v3854_v25  ;;  %v4272_v18 = vor.u32 %v392_v12, %v389_v11  ;;  %v415_v22 = vrot.slane %v413_v14, 6  ;;  %v418_v23 = vrot.slane %v416_v15, 7  ;;  %v396_v25 = vshrl.u32 %v166_v16, 16  ;;  %v3877_v15 = vld [vmem:[#allocation8 + $0x160] sm:$0xff]  }
  0x62   :  { %3445 = vmatpush3.bf16.msra.mxu1 %v3853_v24  ;;  %v385_v17 = vor.u32 %v384_v10, %v381_v9  ;;  %v167_v24 = vrot.slane %v4243_v33, 1  ;;  %v480_v53 = vrot.slane %v4252_v43, 6  ;;  %v180_v54 = vshrl.u32 %v4278_v37, 16  ;;  %v118_v6 = vld [vmem:[#allocation2 + $0x18] sm:$0x7f]  ;;  %v3875_v10 = vld [vmem:[#allocation8 + $0x118] sm:$0xff]  }
  0x63   :  { %3446 = vmatprep.subr.bf16.mxu1 %v3856_v27  ;;  %v423_v27 = vrot.slane %v421_v19, 6  ;;  %v398_v35 = vrot.slane %v396_v25, 6  ;;  %v183_v55 = vshll.u32 %v4278_v37, 16  ;;  %v481_v58 = vrot.slane %v4249_v41, 7 }
  0x64   :  { %3413 = vmatpush3.bf16.msra.mxu0 %v3855_v26  ;;  %v394_v26 = vsel %vm365_vm1, %v385_v17, %v4272_v18  ;;  %v168_v34 = vsel %vm163_vm3, %v165_v8, %v167_v24  ;;  %v4290_v59 = vrot.slane %v4278_v37, 1  ;;  %v182_v60 = vrot.slane %v180_v54, 1 }
  0x65   :  { %3414 = vmatprep.subr.bf16.mxu0 %v3858_v29  ;;  %v399_v29 = vshll.u32 %v166_v16, 16  ;;  %985 = vmatprep.mubr.bf16.mxu0 %v394_v26  ;;  %v407_v42 = vshll.u32 %v168_v34, 16  ;;  %v185_v61 = vrot.slane %v183_v55, 2  ;;  %v150_v8 = vor.u32 %v4252_v43, %v146_v48 }
  0x66   :  { %3447 = vmatpush3.bf16.msra.mxu1 %v3857_v28  ;;  %v426_v28 = vrot.slane %v424_v20, 7  ;;  %v170_v1 = vsel %vm163_vm3, %v167_v24, %v4290_v59  ;;  %v552_v2 = vshrl.u32 %v4290_v59, 16  ;;  %v482_v9 = vor.u32 %v481_v58, %v480_v53  ;;  %v3876_v53 = vld [vmem:[#allocation8 + $0x198] sm:$0xff]  }
  0x67   :  { %3448 = vmatprep.subr.bf16.mxu1 %v3860_v31  ;;  %v419_v31 = vor.u32 %v418_v23, %v415_v22  ;;  %v409_v49 = vrot.slane %v407_v42, 7  ;;  %v186_v3 = vor.u32 %v185_v61, %v182_v60  ;;  %v494_v4 = vshrl.u32 %v170_v1, 16 }
  0x68   :  { %3415 = vmatpush3.bf16.msra.mxu0 %v3859_v30  ;;  %v3867_v30 = vld [vmem:[#allocation8 + $0x148] sm:$0xff]   ;;  %v4280_v38 = vor.u32 %v426_v28, %v423_v27  ;;  %v152_v11 = vshll.u32 %v118_v6, 16  ;;  %v156_v19 = vshrl.u32 %v118_v6, 16  ;;  %v4306_v20 = vrot.slane %v552_v2, 6  ;;  %v3878_v27 = vld [vmem:[#allocation8 + $0x120] sm:$0xff]  }
  0x69   :  { %3468 = vmatprep.subr.bf16.mxu0 %v3864_v40  ;;  %v404_v40 = vshrl.u32 %v168_v34, 16  ;;  %v187_v12 = vsel %vm171_vm2, %v4266_v7, %v186_v3  ;;  %v496_v13 = vrot.slane %v494_v4, 6  ;;  %v561_v24 = vshrl.u32 %v186_v3, 16  ;;  %v3880_v34 = vld [vmem:[#allocation8 + $0x168] sm:$0xff]   ;;  %v125_v4 = vld [vmem:[#allocation2 + $0x8] sm:$0xfe] }
  0x6a   :  { %3449 = vmatpush3.bf16.msra.mxu1 %v3863_v39  ;;  %v401_v39 = vrot.slane %v399_v29, 7  ;;  %v428_v45 = vsel %vm365_vm1, %v419_v31, %v4280_v38  ;;  %v503_v16 = vshrl.u32 %v187_v12, 16  ;;  %v506_v17 = vshll.u32 %v187_v12, 16 }
  0x6b   :  { %3762 = vmatprep.subr.bf16.mxu1 %v4136_v52  ;;  %986 = vmatmul.mubr.bf16.vlgmr.msra.gmra.mrb[0].mxu0 %v377_v5  ;;  %v406_v47 = vrot.slane %v404_v40, 6  ;;  %v497_v5 = vshll.u32 %v170_v1, 16  ;;  %v154_v48 = vrot.slane %v152_v11, 1  ;;  %v539_v23 = vrot.slane %v152_v11, 7  ;;  %v3881_v1 = vld [vmem:[#allocation8 + $0x128] sm:$0xff]  }
  0x6c   :  { %3469 = vmatpush3.bf16.msra.mxu0 %v3865_v21  ;;  %v402_v46 = vor.u32 %v401_v39, %v398_v35  ;;  %1042 = vmatprep.mubr.bf16.mxu1 %v428_v45  ;;  %v3872_v21 = vld [vmem:[#allocation8 + $0x190] sm:$0xff]   ;;  %v505_v25 = vrot.slane %v503_v16, 6  ;;  %v508_v26 = vrot.slane %v506_v17, 7  ;;  %v538_v7 = vrot.slane %v156_v19, 6 }
  0x6d   :  { %3470 = vmatprep.subr.bf16.mxu0 %v3867_v30  ;;  %v410_v56 = vor.u32 %v409_v49, %v406_v47  ;;  %v499_v14 = vrot.slane %v497_v5, 7  ;;  %v564_v28 = vshll.u32 %v186_v3, 16  ;;  %v155_v29 = vsel %vm127_vm0, %v150_v8, %v154_v48 }
  0x6e   :  { %v158_v31 = vor.u32 %v156_v19, %v154_v48  ;;  %v563_v35 = vrot.slane %v561_v24, 6  ;;  %v488_v39 = vshll.u32 %v155_v29, 16  ;;  %v509_v40 = vor.u32 %v508_v26, %v505_v25  ;;  %v3886_v48 = vld [vmem:[#allocation8 + $0x178] sm:$0xff]  }
  0x6f   :  { %v411_v62 = vsel %vm365_vm1, %v402_v46, %v410_v56  ;;  %v4308_v22 = vor.u32 %v499_v14, %v496_v13  ;;  %v540_v42 = vor.u32 %v539_v23, %v538_v7  ;;  %v566_v46 = vrot.slane %v564_v28, 7 }
  0x70   :  { %3471 = vmatpush3.bf16.msra.mxu0 %v3868_v36  ;;  %1043 = vmatmul.mubr.bf16.vlgmr.msra.gmra.mrb[0].mxu1 %v411_v62  ;;  %v485_v36 = vshrl.u32 %v155_v29, 16  ;;  %v546_v45 = vshll.u32 %v158_v31, 16  ;;  %v555_v47 = vshll.u32 %v4290_v59, 16  ;;  %v483_v59 = vsel %vm365_vm1, %v4256_v57, %v482_v9  ;;  %v3883_v57 = vld [vmem:[#allocation8 + $0x170] sm:$0xff]  }
  0x71   :  { %3472 = vmatprep.subr.bf16.mxu0 %v3870_v44  ;;  %3763 = vmatpush3.bf16.msra.mxu1 %v3866_v50  ;;  %v501_v30 = vsel %vm365_vm1, %v410_v56, %v4308_v22  ;;  %v543_v44 = vshrl.u32 %v158_v31, 16  ;;  %v490_v50 = vrot.slane %v488_v39, 7  ;;  %v567_v60 = vor.u32 %v566_v46, %v563_v35  ;;  %v3885_v29 = vld [vmem:[#allocation8 + $0x1b0] sm:$0xff]  }
  0x72   :  { %3764 = vmatprep.subr.bf16.mxu1 %v4136_v52  ;;  %v487_v49 = vrot.slane %v485_v36, 6  ;;  %v548_v58 = vrot.slane %v546_v45, 7  ;;  %v557_v61 = vrot.slane %v555_v47, 7  ;;  %v212_v5 = vrot.slane %v4252_v43, 2  ;;  %v3887_v36 = vld [vmem:[#allocation8 + $0x138] sm:$0xff]  }
  0x73   :  { %v545_v56 = vrot.slane %v543_v44, 6  ;;  %v568_v2 = vsel %vm365_vm1, %v509_v40, %v567_v60  ;;  %v202_v8 = vshrl.u32 %v125_v4, 16  ;;  %v193_v43 = vrot.slane %v4241_v32, 2  ;;  %v124_v45 = vld [vmem:[#allocation2 + $0x20] sm:$0x1] }
  0x74   :  { %3473 = vmatpush3.bf16.msra.mxu0 %v3871_v51  ;;  %v510_v51 = vsel %vm365_vm1, %v4280_v38, %v509_v40  ;;  %v491_v62 = vor.u32 %v490_v50, %v487_v49  ;;  %v558_v3 = vor.u32 %v557_v61, %v4306_v20  ;;  %v194_v13 = vrot.slane %v4243_v33, 2  ;;  %v3888_v61 = vld [vmem:[#allocation8 + $0x1b8] sm:$0xff]  }
  0x75   :  { %3474 = vmatprep.subr.bf16.mxu0 %v3874_v0  ;;  %3765 = vmatpush3.bf16.msra.mxu1 %v3869_v63  ;;  %v3879_v63 = vld [vmem:[#allocation8 + $0x1a0] sm:$0xff]   ;;  %v4321_v0 = vsel %vm365_vm1, %v482_v9, %v540_v42  ;;  %v549_v38 = vor.u32 %v548_v58, %v545_v56  ;;  %v215_v9 = vrot.slane %v4249_v41, 3  ;;  %v204_v14 = vrot.slane %v202_v8, 2  ;;  %v3884_v41 = vld [vmem:[#allocation8 + $0x130] sm:$0xff]  }
  0x76   :  { %3766 = vmatprep.subr.bf16.mxu1 %v4136_v52  ;;  %1050 = vmatprep.mubr.bf16.mxu1 %v510_v51  ;;  %v492_v6 = vsel %vm365_vm1, %v4272_v18, %v491_v62  ;;  %v559_v12 = vsel %vm365_vm1, %v4308_v22, %v558_v3  ;;  %v3882_v18 = vld [vmem:[#allocation8 + $0x1a8] sm:$0xff]   ;;  %v239_v17 = vrot.slane %v125_v4, 3  ;;  %v195_v19 = vsel %vm192_vm4, %v193_v43, %v194_v13 }
  0x77   :  { %993 = vmatprep.mubr.bf16.mxu0 %v492_v6  ;;  %v550_v11 = vsel %vm365_vm1, %v491_v62, %v549_v38  ;;  %v4335_v16 = vor.u32 %v215_v9, %v212_v5  ;;  %v430_v20 = vshrl.u32 %v193_v43, 16  ;;  %v240_v32 = vrot.slane %v4243_v33, 3 }
  0x78   :  { %3475 = vmatpush3.bf16.msra.mxu0 %v3875_v10  ;;  %1051 = vmatmul.mubr.bf16.gmra.mrb[4].mxu1 %v501_v30  ;;  %v205_v10 = vshll.u32 %v125_v4, 16  ;;  %v438_v23 = vshrl.u32 %v195_v19, 16  ;;  %v441_v24 = vshll.u32 %v195_v19, 16  ;;  %v464_v25 = vshrl.u32 %v239_v17, 16 }
  0x79   :  { %3476 = vmatprep.subr.bf16.mxu0 %v3877_v15  ;;  %3767 = vmatpush3.bf16.msra.mxu1 %v3872_v21  ;;  %v433_v21 = vshll.u32 %v193_v43, 16  ;;  %v432_v26 = vrot.slane %v430_v20, 6  ;;  %v241_v7 = vsel %vm238_vm6, %v239_v17, %v240_v32  ;;  %v467_v28 = vshll.u32 %v239_v17, 16 }
  0x7a   :  { %3768 = vmatprep.subr.bf16.mxu1 %v4136_v52  ;;  %1058 = vmatprep.mubr.bf16.mxu1 %v568_v2  ;;  %v207_v15 = vrot.slane %v205_v10, 3  ;;  %v440_v35 = vrot.slane %v438_v23, 6  ;;  %v443_v44 = vrot.slane %v441_v24, 7  ;;  %v466_v49 = vrot.slane %v464_v25, 6 }
  0x7b   :  { %994 = vmatmul.mubr.bf16.gmra.mrb[4].mxu0 %v483_v59  ;;  %v469_v50 = vrot.slane %v467_v28, 7  ;;  %v472_v58 = vshrl.u32 %v241_v7, 16  ;;  %v475_v59 = vshll.u32 %v241_v7, 16  ;;  %v224_v3 = vrot.slane %v183_v55, 3 }
  0x7c   :  { %3477 = vmatpush3.bf16.msra.mxu0 %v3878_v27  ;;  %1001 = vmatprep.mubr.bf16.mxu0 %v550_v11  ;;  %v208_v22 = vor.u32 %v207_v15, %v204_v14  ;;  %v435_v27 = vrot.slane %v433_v21, 7  ;;  %v4350_v56 = vor.u32 %v443_v44, %v440_v35  ;;  %v242_v5 = vrot.slane %v4278_v37, 3  ;;  %v126_v15 = vld [vmem:[#allocation2 + $0x20] sm:$0x3] }
  0x7d   :  { %3478 = vmatprep.subr.bf16.mxu0 %v3880_v34  ;;  %3769 = vmatpush3.bf16.msra.mxu1 %v3876_v53  ;;  %v470_v62 = vor.u32 %v469_v50, %v466_v49  ;;  %v474_v2 = vrot.slane %v472_v58, 6  ;;  %v477_v4 = vrot.slane %v475_v59, 7  ;;  %v228_v6 = vshrl.u32 %v124_v45, 16  ;;  %v3889_v59 = vld [vmem:[#allocation8 + $0x200] sm:$0xff]  }
  0x7e   :  { %3770 = vmatprep.subr.bf16.mxu1 %v4136_v52  ;;  %v217_v30 = vsel %vm200_vm5, %v208_v22, %v4335_v16  ;;  %v447_v31 = vshrl.u32 %v208_v22, 16  ;;  %v450_v34 = vshll.u32 %v208_v22, 16  ;;  %v436_v42 = vor.u32 %v435_v27, %v432_v26 }
  0x7f   :  { %v455_v39 = vshrl.u32 %v217_v30, 16  ;;  %v458_v40 = vshll.u32 %v217_v30, 16  ;;  %v231_v8 = vshll.u32 %v124_v45, 16  ;;  %v198_v10 = vrot.slane %v124_v45, 2 }
  0x80   :  { %3479 = vmatpush3.bf16.msra.mxu0 %v3881_v1  ;;  %1059 = vmatmul.mubr.bf16.gmra.mrb[8].mxu1 %v559_v12  ;;  %v449_v46 = vrot.slane %v447_v31, 6  ;;  %v452_v47 = vrot.slane %v450_v34, 7  ;;  %v445_v1 = vsel %vm365_vm1, %v436_v42, %v4350_v56  ;;  %v478_v9 = vor.u32 %v477_v4, %v474_v2  ;;  %v3893_v2 = vld [vmem:[#allocation8 + $0x208] sm:$0xff]  }
  0x81   :  { %3771 = vmatpush3.bf16.msra.mxu1 %v3879_v63  ;;  %3480 = vmatprep.subr.bf16.mxu0 %v3883_v57  ;;  %v457_v51 = vrot.slane %v455_v39, 6  ;;  %v460_v53 = vrot.slane %v458_v40, 7  ;;  %v221_v63 = vrot.slane %v180_v54, 2  ;;  %v243_v11 = vsel %vm238_vm6, %v240_v32, %v242_v5  ;;  %v3895_v4 = vld [vmem:[#allocation8 + $0x288] sm:$0xff]  }
  0x82   :  { %3772 = vmatprep.subr.bf16.mxu1 %v4136_v52  ;;  %3778 = vmatprep.mubr.msk.bf16.mxu1 %vm4137_vm7, %v4136_v52  ;;  %v453_v60 = vor.u32 %v452_v47, %v449_v46  ;;  %v230_v12 = vrot.slane %v228_v6, 2  ;;  %v530_v14 = vshrl.u32 %v243_v11, 16  ;;  %v479_v17 = vsel %vm365_vm1, %v470_v62, %v478_v9  ;;  %v3898_v6 = vld [vmem:[#allocation8 + $0x1d0] sm:$0xff]  }
  0x83   :  { %1002 = vmatmul.mubr.bf16.gmra.mrb[8].mxu0 %v4321_v0  ;;  %v461_v38 = vor.u32 %v460_v53, %v457_v51  ;;  %v196_v0 = vrot.slane %v4278_v37, 2  ;;  %v225_v57 = vor.u32 %v224_v3, %v221_v63  ;;  %v533_v20 = vshll.u32 %v243_v11, 16  ;;  %v3890_v63 = vld [vmem:[#allocation8 + $0x1c0] sm:$0xff]   ;;  %v3894_v3 = vld [vmem:[#allocation8 + $0x1c8] sm:$0xff]  }
  0x84   :  { %3481 = vmatpush3.bf16.msra.mxu0 %v3884_v41  ;;  %v233_v33 = vrot.slane %v231_v8, 3  ;;  %v3901_v8 = vld [vmem:[#allocation8 + $0x218] sm:$0xff]   ;;  %v3905_v11 = vld [vmem:[#allocation8 + $0x220] sm:$0xff]  }
  0x85   :  { %3773 = vmatpush3.bf16.msra.mxu1 %v3882_v18  ;;  %3482 = vmatprep.subr.bf16.mxu0 %v3886_v48  ;;  %v462_v54 = vsel %vm365_vm1, %v453_v60, %v461_v38  ;;  %v197_v55 = vsel %vm192_vm4, %v194_v13, %v196_v0  ;;  %v226_v37 = vsel %vm200_vm5, %v4335_v16, %v225_v57  ;;  %v532_v48 = vrot.slane %v530_v14, 6  ;;  %v3910_v14 = vld [vmem:[#allocation8 + $0x1e8] sm:$0xff]  }
  0x86   :  { %3774 = vmatprep.subr.bf16.mxu1 %v4136_v52  ;;  %1099 = vmatprep.mubr.bf16.mxu0 %v462_v54  ;;  %v512_v43 = vshrl.u32 %v197_v55, 16  ;;  %v515_v18 = vshll.u32 %v197_v55, 16  ;;  %v521_v41 = vshrl.u32 %v226_v37, 16  ;;  %v524_v19 = vshll.u32 %v226_v37, 16  ;;  %v3899_v54 = vld [vmem:[#allocation8 + $0x290] sm:$0xff]   ;;  %v3904_v55 = vld [vmem:[#allocation8 + $0x258] sm:$0xff]  }
  0x87   :  { %v535_v23 = vrot.slane %v533_v20, 7  ;;  %v199_v16 = vsel %vm192_vm4, %v196_v0, %v198_v10  ;;  %v234_v25 = vor.u32 %v233_v33, %v230_v12  ;;  %v3896_v0 = vld [vmem:[#allocation8 + $0x248] sm:$0xff]   ;;  %v3902_v10 = vld [vmem:[#allocation8 + $0x1d8] sm:$0xff]   ;;  %v3906_v12 = vld [vmem:[#allocation8 + $0x1e0] sm:$0xff]  }
  0x88   :  { %3483 = vmatpush3.bf16.msra.mxu0 %v3887_v36  ;;  %v514_v21 = vrot.slane %v512_v43, 6  ;;  %v517_v13 = vrot.slane %v515_v18, 7  ;;  %v523_v32 = vrot.slane %v521_v41, 6  ;;  %v526_v22 = vrot.slane %v524_v19, 7  ;;  %v3907_v37 = vld [vmem:[#allocation8 + $0x2a0] sm:$0xff]   ;;  %v3909_v18 = vld [vmem:[#allocation8 + $0x228] sm:$0xff]  }
  0x89   :  { %3775 = vmatpush3.bf16.msra.mxu1 %v3885_v29  ;;  %v570_v26 = vshrl.u32 %v199_v16, 16  ;;  %v573_v27 = vshll.u32 %v199_v16, 16  ;;  %v536_v28 = vor.u32 %v535_v23, %v532_v48  ;;  %v244_v29 = vrot.slane %v126_v15, 3  ;;  %3513 = vmatprep.subr.bf16.mxu0 %v3889_v59  ;;  %v3908_v43 = vld [vmem:[#allocation8 + $0x260] sm:$0xff]   ;;  %v3911_v15 = vld [vmem:[#allocation8 + $0x2a8] sm:$0xff]   ;;  %v3913_v41 = vld [vmem:[#allocation8 + $0x230] sm:$0xff]  }
  0x8a   :  { %3776 = vmatprep.subr.bf16.mxu1 %v4136_v52  ;;  %v518_v24 = vor.u32 %v517_v13, %v514_v21  ;;  %v527_v7 = vor.u32 %v526_v22, %v523_v32  ;;  %v235_v30 = vsel %vm200_vm5, %v225_v57, %v234_v25  ;;  %v3900_v57 = vld [vmem:[#allocation8 + $0x250] sm:$0xff]   ;;  %v3917_v13 = vld [vmem:[#allocation8 + $0x238] sm:$0xff]   ;;  %v3921_v22 = vld [vmem:[#allocation8 + $0x300] sm:$0xff]  }
  0x8b   :  { %1100 = vmatmul.mubr.bf16.vlgmr.msra.gmra.mrb[12].mxu0 %v445_v1  ;;  %v572_v31 = vrot.slane %v570_v26, 6  ;;  %v575_v34 = vrot.slane %v573_v27, 7  ;;  %v579_v36 = vshrl.u32 %v235_v30, 16  ;;  %v582_v39 = vshll.u32 %v235_v30, 16  ;;  %v3892_v1 = vld [vmem:[#allocation8 + $0x240] sm:$0xff]   ;;  %v3914_v19 = vld [vmem:[#allocation8 + $0x1f0] sm:$0xff]  }
  0x8c   :  { %v528_v35 = vsel %vm365_vm1, %v461_v38, %v527_v7  ;;  %v519_v40 = vsel %vm365_vm1, %v4350_v56, %v518_v24  ;;  %v537_v42 = vsel %vm365_vm1, %v478_v9, %v536_v28  ;;  %v245_v44 = vsel %vm238_vm6, %v242_v5, %v244_v29  ;;  %v3891_v38 = vld [vmem:[#allocation8 + $0x280] sm:$0xff]   ;;  %3514 = vmatpush3.bf16.msra.mxu0 %v3890_v63  ;;  %v3897_v5 = vld [vmem:[#allocation8 + $0x210] sm:$0xff]   ;;  %v3903_v9 = vld [vmem:[#allocation8 + $0x298] sm:$0xff]  }
  0x8d   :  { %3777 = vmatpush3.bf16.msra.mxu1 %v3888_v61  ;;  %1107 = vmatprep.mubr.bf16.mxu0 %v528_v35  ;;  %v581_v45 = vrot.slane %v579_v36, 6  ;;  %v584_v46 = vrot.slane %v582_v39, 7  ;;  %v588_v47 = vshrl.u32 %v245_v44, 16  ;;  %v591_v49 = vshll.u32 %v245_v44, 16  ;;  %v3915_v20 = vld [vmem:[#allocation8 + $0x2b0] sm:$0xff]   ;;  %v3918_v48 = vld [vmem:[#allocation8 + $0x1f8] sm:$0xff]  }
  0x8e   :  { %v576_v58 = vor.u32 %v575_v34, %v572_v31  ;;  %3547 = vmatprep.subr.bf16.mxu1 %v3891_v38  ;;  %3515 = vmatprep.subr.bf16.mxu0 %v3893_v2  ;;  %v3916_v21 = vld [vmem:[#allocation8 + $0x270] sm:$0xff]   ;;  %v3919_v33 = vld [vmem:[#allocation8 + $0x2b8] sm:$0xff]  }
  0x8f   :  { %v585_v50 = vor.u32 %v584_v46, %v581_v45  ;;  %v590_v51 = vrot.slane %v588_v47, 6  ;;  %v593_v53 = vrot.slane %v591_v49, 7  ;;  %v3920_v32 = vld [vmem:[#allocation8 + $0x278] sm:$0xff]   ;;  %v3220_v27 = vld [vmem:[%s4753_s3] ss:$0 sm:$0xff] }
  0x90   :  { %3779 = vmatmul.mubr.bf16.vlgmr.msra.gmra.mrb[12].mxu1 %v479_v17  ;;  %v577_v61 = vsel %vm365_vm1, %v518_v24, %v576_v58  ;;  %3516 = vmatpush3.bf16.msra.mxu0 %v3894_v3  ;;  %v3912_v17 = vld [vmem:[#allocation8 + $0x268] sm:$0xff]  }
  0x91   :  { %3782 = vmatprep.mubr.msk.bf16.mxu1 %vm4137_vm7, %v4136_v52  ;;  %v586_v60 = vsel %vm365_vm1, %v527_v7, %v585_v50  ;;  %v594_v56 = vor.u32 %v593_v53, %v590_v51  ;;  %3548 = vmatpush3.bf16.msra.mxu1 %v3892_v1 }
  0x92   :  { %3549 = vmatprep.subr.bf16.mxu1 %v3895_v4  ;;  %3517 = vmatprep.subr.bf16.mxu0 %v3897_v5 }
  0x93   :  { %1108 = vmatmul.mubr.bf16.gmra.mrb[16].mxu0 %v519_v40  ;;  %v595_v62 = vsel %vm365_vm1, %v536_v28, %v594_v56 }
  0x94   :  { %1115 = vmatprep.mubr.bf16.mxu0 %v586_v60  ;;  %3518 = vmatpush3.bf16.msra.mxu0 %v3898_v6 }
  0x95   :  { %3550 = vmatpush3.bf16.msra.mxu1 %v3896_v0  ;;  %3519 = vmatprep.subr.bf16.mxu0 %v3901_v8 }
  0x96   :  { %3551 = vmatprep.subr.bf16.mxu1 %v3899_v54 }
  0x98   :  { %3783 = vmatmul.mubr.bf16.gmra.mrb[16].mxu1 %v537_v42  ;;  %3520 = vmatpush3.bf16.msra.mxu0 %v3902_v10 }
  0x99   :  { %3786 = vmatprep.mubr.msk.bf16.mxu1 %vm4137_vm7, %v4136_v52  ;;  %3552 = vmatpush3.bf16.msra.mxu1 %v3900_v57 }
  0x9a   :  { %3553 = vmatprep.subr.bf16.mxu1 %v3903_v9  ;;  %3521 = vmatprep.subr.bf16.mxu0 %v3905_v11 }
  0x9b   :  { %1116 = vmatmul.mubr.bf16.gmra.mrb[20].mxu0 %v577_v61 }
  0x9c   :  { %3522 = vmatpush3.bf16.msra.mxu0 %v3906_v12 }
  0x9d   :  { %3554 = vmatpush3.bf16.msra.mxu1 %v3904_v55  ;;  %3523 = vmatprep.subr.bf16.mxu0 %v3909_v18 }
  0x9e   :  { %3555 = vmatprep.subr.bf16.mxu1 %v3907_v37 }
  0xa0   :  { %3787 = vmatmul.mubr.bf16.gmra.mrb[20].mxu1 %v595_v62  ;;  %3524 = vmatpush3.bf16.msra.mxu0 %v3910_v14 }
  0xa1   :  { %3556 = vmatpush3.bf16.msra.mxu1 %v3908_v43  ;;  %3525 = vmatprep.subr.bf16.mxu0 %v3913_v41 }
  0xa2   :  { %3557 = vmatprep.subr.bf16.mxu1 %v3911_v15 }
  0xa4   :  { %3526 = vmatpush3.bf16.msra.mxu0 %v3914_v19 }
  0xa5   :  { %3558 = vmatpush3.bf16.msra.mxu1 %v3912_v17  ;;  %3527 = vmatprep.subr.bf16.mxu0 %v3917_v13 }
  0xa6   :  { %3559 = vmatprep.subr.bf16.mxu1 %v3915_v20 }
  0xa8   :  { %3528 = vmatpush3.bf16.msra.mxu0 %v3918_v48 }
  0xa9   :  { %3560 = vmatpush3.bf16.msra.mxu1 %v3916_v21  ;;  %3581 = vmatprep.subr.bf16.mxu0 %v3921_v22 }
  0xaa   :  { %3561 = vmatprep.subr.bf16.mxu1 %v3919_v33  ;;  %v4394_v33 = vld [vmem:[#allocation2] sm:$0x80] }
  0xad   :  { %3562 = vmatpush3.bf16.msra.mxu1 %v3920_v32  ;;  %v1199_v32 = vld [vmem:[#allocation2] sm:$0xc0] }
  0xae   :  { %3790 = vmatprep.subr.bf16.mxu1 %v4136_v52 }
 0x13e   :  { %v3416_v23 = vpop.f32.mrb[0].mxu0 }
 0x13f   :  { %v3417_v16 = vpop.f32.mrb[1].mxu0 }
 0x140   :  { %v3418_v24 = vadd.f32 %v3417_v16, %v3416_v23  ;;  %v3419_v25 = vpop.f32.mrb[2].mxu0  ;;  %v4396_v16 = vld [vmem:[#allocation2 + $0x20] sm:$0x1] }
 0x141   :  { %v3420_v26 = vpop.f32.mrb[3].mxu0 }
 0x142   :  { %v3421_v7 = vadd.f32 %v3420_v26, %v3419_v25  ;;  %v988_v28 = vadd.f32 %v3418_v24, %v3220_v27  ;;  %v1214_v24 = vshll.u32 %v4394_v33, 16  ;;  %v1446_v25 = vshrl.u32 %v1199_v32, 16 }
 0x143   :  { %v3450_v29 = vpop.f32.mrb[0].mxu1  ;;  %v1449_v26 = vshll.u32 %v1199_v32, 16 }
 0x144   :  { %v3451_v30 = vpop.f32.mrb[1].mxu1  ;;  %v991_v31 = vadd.f32 %v3421_v7, %v3220_v27 }
 0x145   :  { %v3452_v34 = vadd.f32 %v3451_v30, %v3450_v29  ;;  %v3453_v35 = vpop.f32.mrb[2].mxu1  ;;  %v4399_v29 = vld [vmem:[#allocation6] sm:$0xff]  ;;  %v4401_v30 = vld [vmem:[#allocation6 + $0x8] sm:$0xff] }
 0x146   :  { %v3454_v36 = vpop.f32.mrb[3].mxu1 }
 0x147   :  { %v1045_v39 = vadd.f32 %v3452_v34, %v988_v28  ;;  %v3455_v40 = vadd.f32 %v3454_v36, %v3453_v35  ;;  %v1307_v35 = vshrl.u32 %v4396_v16, 16  ;;  %v1310_v36 = vshll.u32 %v4396_v16, 16 }
 0x149   :  { %v1048_v42 = vadd.f32 %v3455_v40, %v991_v31 }
 0x14b   :  { %v3456_v44 = vpop.f32.mrb[4].mxu1 }
 0x14c   :  { %v3457_v45 = vpop.f32.mrb[5].mxu1 }
 0x14d   :  { %v3458_v46 = vadd.f32 %v3457_v45, %v3456_v44  ;;  %v3459_v47 = vpop.f32.mrb[6].mxu1 }
 0x14e   :  { %v3460_v49 = vpop.f32.mrb[7].mxu1  ;;  %v3422_v50 = vpop.f32.mrb[4].mxu0 }
 0x14f   :  { %v3461_v51 = vadd.f32 %v3460_v49, %v3459_v47  ;;  %v3423_v53 = vpop.f32.mrb[5].mxu0  ;;  %v1212_v47 = vshrl.u32 %v4394_v33, 16  ;;  %v1216_v49 = vrot.slane %v1214_v24, 1 }
 0x150   :  { %v3424_v58 = vadd.f32 %v3423_v53, %v3422_v50  ;;  %v3425_v60 = vpop.f32.mrb[6].mxu0  ;;  %v1448_v50 = vrot.slane %v1446_v25, 6 }
 0x151   :  { %v3426_v56 = vpop.f32.mrb[7].mxu0 }
 0x152   :  { %v996_v61 = vadd.f32 %v3424_v58, %v3220_v27  ;;  %v3427_v62 = vadd.f32 %v3426_v56, %v3425_v60 }
 0x153   :  { %v3462_v59 = vpop.f32.mrb[8].mxu1 }
 0x154   :  { %v3463_v63 = vpop.f32.mrb[9].mxu1  ;;  %v999_v38 = vadd.f32 %v3427_v62, %v3220_v27  ;;  %v1053_v1 = vadd.f32 %v3458_v46, %v996_v61  ;;  %v4408_v62 = vrot.slane %v1307_v35, 2 }
 0x155   :  { %v3464_v2 = vadd.f32 %v3463_v63, %v3462_v59  ;;  %v3465_v3 = vpop.f32.mrb[10].mxu1  ;;  %v4410_v59 = vrot.slane %v1310_v36, 3 }
 0x156   :  { %v3466_v4 = vpop.f32.mrb[11].mxu1  ;;  %v1056_v0 = vadd.f32 %v3461_v51, %v999_v38  ;;  %v3428_v5 = vpop.f32.mrb[8].mxu0  ;;  %v1451_v51 = vrot.slane %v1449_v26, 7 }
 0x157   :  { %v3467_v6 = vadd.f32 %v3466_v4, %v3465_v3  ;;  %v3429_v54 = vpop.f32.mrb[9].mxu0  ;;  %v4414_v3 = vld [vmem:[#allocation6 + $0x10] sm:$0xff]  ;;  %v1217_v4 = vor.u32 %v1216_v49, %v1212_v47 }
 0x158   :  { %v3430_v57 = vadd.f32 %v3429_v54, %v3428_v5  ;;  %v3431_v8 = vpop.f32.mrb[10].mxu0  ;;  %v1452_v5 = vor.u32 %v1451_v51, %v1448_v50 }
 0x159   :  { %v3432_v10 = vpop.f32.mrb[11].mxu0 }
 0x15a   :  { %v1004_v9 = vadd.f32 %v3430_v57, %v3220_v27  ;;  %v3433_v55 = vadd.f32 %v3432_v10, %v3431_v8 }
 0x15c   :  { %v1007_v11 = vadd.f32 %v3433_v55, %v3220_v27  ;;  %v4390_v12 = vadd.f32 %v3464_v2, %v1004_v9  ;;  %v4420_v9 = vld [vmem:[#allocation6 + $0x18] sm:$0xff] }
 0x15e   :  { %v4392_v37 = vadd.f32 %v3467_v6, %v1007_v11  ;;  %v3484_v43 = vpop.f32.mrb[12].mxu0  ;;  %v1246_v6 = vrot.slane %v4394_v33, 1 }
 0x15f   :  { %v3485_v18 = vpop.f32.mrb[13].mxu0 }
 0x160   :  { %v3486_v15 = vadd.f32 %v3485_v18, %v3484_v43  ;;  %v3487_v17 = vpop.f32.mrb[14].mxu0  ;;  %v1313_v18 = vor.u32 %v4410_v59, %v4408_v62 }
 0x161   :  { %v3488_v19 = vpop.f32.mrb[15].mxu0 }
 0x162   :  { %v1102_v21 = vadd.f32 %v3486_v15, %v1045_v39  ;;  %v3489_v13 = vadd.f32 %v3488_v19, %v3487_v17 }
 0x163   :  { %v1158_v14 = vpop.f32.mrb[12].mxu1 }
 0x164   :  { %v3780_v41 = vpop.f32.mrb[13].mxu1  ;;  %v1159_v22 = vadd.f32 %v1158_v14, %v1102_v21  ;;  %v1105_v23 = vadd.f32 %v3489_v13, %v1048_v42  ;;  %v1278_v14 = vrot.slane %v4396_v16, 2 }
 0x165   :  { %v1161_v20 = vpop.f32.mrb[14].mxu1 }
 0x166   :  { %v3781_v48 = vpop.f32.mrb[15].mxu1  ;;  %v1181_v27 = vmax.f32 %v1159_v22, 0.0  ;;  %v1162_v7 = vadd.f32 %v1161_v20, %v1105_v23  ;;  %v3490_v28 = vpop.f32.mrb[16].mxu0 }
 0x167   :  { %v3491_v31 = vpop.f32.mrb[17].mxu0 }
 0x168   :  { %v1182_v39 = vmax.f32 %v1162_v7, 0.0  ;;  %v3492_v40 = vadd.f32 %v3491_v31, %v3490_v28  ;;  %v3493_v42 = vpop.f32.mrb[18].mxu0  ;;  %v1187_v53 = vmul.f32 %v1181_v27, %v4399_v29 }
 0x169   :  { %v3494_v45 = vpop.f32.mrb[19].mxu0 }
 0x16a   :  { %v1188_v58 = vmul.f32 %v1182_v39, %v4401_v30  ;;  %v1110_v60 = vadd.f32 %v3492_v40, %v1053_v1  ;;  %v3495_v56 = vadd.f32 %v3494_v45, %v3493_v42 }
 0x16b   :  { %v1166_v34 = vpop.f32.mrb[16].mxu1 }
 0x16c   :  { %v3784_v44 = vpop.f32.mrb[17].mxu1  ;;  %v4412_v63 = vpack.c.bf16 %v1188_v58, %v1187_v53  ;;  %v1167_v38 = vadd.f32 %v1166_v34, %v1110_v60  ;;  %v1113_v2 = vadd.f32 %v3495_v56, %v1056_v0  ;;  %v4449_v58 = vld [vmem:[#allocation6 + $0x28] sm:$0xff] }
 0x16d   :  { %v1169_v46 = vpop.f32.mrb[18].mxu1  ;;  %v4438_v44 = vld [vmem:[#allocation6 + $0x20] sm:$0xff] }
 0x16e   :  { %v3785_v61 = vpop.f32.mrb[19].mxu1  ;;  %1196 = vst [vmem:[#allocation2 + $0x8] sm:$0xff] %v4412_v63  ;;  %v1183_v54 = vmax.f32 %v1167_v38, 0.0  ;;  %v1170_v1 = vadd.f32 %v1169_v46, %v1113_v2  ;;  %v3496_v57 = vpop.f32.mrb[20].mxu0  ;;  %v1219_v8 = vshll.u32 %v4412_v63, 16  ;;  %v1223_v10 = vshrl.u32 %v4412_v63, 16 }
 0x16f   :  { %v3497_v55 = vpop.f32.mrb[21].mxu0  ;;  %v1247_v0 = vrot.slane %v4412_v63, 1  ;;  %v4424_v43 = vrot.slane %v4412_v63, 2 }
 0x170   :  { %v1189_v15 = vmul.f32 %v1183_v54, %v4414_v3  ;;  %v1184_v17 = vmax.f32 %v1170_v1, 0.0  ;;  %v3498_v41 = vadd.f32 %v3497_v55, %v3496_v57  ;;  %v3499_v19 = vpop.f32.mrb[22].mxu0  ;;  %v1221_v21 = vrot.slane %v1219_v8, 1 }
 0x171   :  { %v3500_v13 = vpop.f32.mrb[23].mxu0  ;;  %v1453_v33 = vrot.slane %v1223_v10, 6  ;;  %v1454_v32 = vrot.slane %v1219_v8, 7  ;;  %v1253_v22 = vrot.slane %v1223_v10, 1  ;;  %v1254_v23 = vrot.slane %v1219_v8, 2 }
 0x172   :  { %v1190_v24 = vmul.f32 %v1184_v17, %v4420_v9  ;;  %v3501_v25 = vadd.f32 %v3500_v13, %v3499_v19  ;;  %v1118_v26 = vadd.f32 %v3498_v41, %v4390_v12  ;;  %v1222_v7 = vsel %vm127_vm0, %v1217_v4, %v1221_v21 }
 0x173   :  { %v1174_v11 = vpop.f32.mrb[20].mxu1  ;;  %v1225_v28 = vor.u32 %v1223_v10, %v1221_v21  ;;  %v1458_v31 = vshrl.u32 %v1222_v7, 16  ;;  %v1461_v34 = vshll.u32 %v1222_v7, 16  ;;  %v4433_v35 = vor.u32 %v1454_v32, %v1453_v33 }
 0x174   :  { %v3788_v20 = vpop.f32.mrb[21].mxu1  ;;  %v4435_v36 = vpack.c.bf16 %v1190_v24, %v1189_v15  ;;  %v1175_v39 = vadd.f32 %v1174_v11, %v1118_v26  ;;  %v1121_v40 = vadd.f32 %v3501_v25, %v4392_v37  ;;  %v1255_v42 = vor.u32 %v1254_v23, %v1253_v22 }
 0x175   :  { %v1177_v48 = vpop.f32.mrb[22].mxu1  ;;  %v1460_v45 = vrot.slane %v1458_v31, 6  ;;  %v1463_v46 = vrot.slane %v1461_v34, 7  ;;  %v1456_v12 = vsel %vm365_vm1, %v1452_v5, %v4433_v35  ;;  %v1248_v47 = vsel %vm163_vm3, %v1246_v6, %v1247_v0  ;;  %v4472_v31 = vld [vmem:[#allocation2 + $0x8] sm:$0xfe]  ;;  %v3922_v34 = vld [vmem:[#allocation8 + $0x2c0] sm:$0xff]  }
 0x176   :  { %v3789_v27 = vpop.f32.mrb[23].mxu1  ;;  %v1185_v49 = vmax.f32 %v1175_v39, 0.0  ;;  %v1178_v50 = vadd.f32 %v1177_v48, %v1121_v40  ;;  %v4444_v51 = vshll.u32 %v4435_v36, 16  ;;  %v4447_v53 = vshrl.u32 %v4435_v36, 16 }
 0x177   :  { %v1464_v37 = vor.u32 %v1463_v46, %v1460_v45  ;;  %v1492_v60 = vshrl.u32 %v1255_v42, 16  ;;  %v1495_v56 = vshll.u32 %v1255_v42, 16  ;;  %v1249_v61 = vrot.slane %v4435_v36, 1 }
 0x178   :  { %v1191_v63 = vmul.f32 %v1185_v49, %v4438_v44  ;;  %v1186_v38 = vmax.f32 %v1178_v50, 0.0  ;;  %v1229_v2 = vrot.slane %v4444_v51, 1  ;;  %v1256_v4 = vrot.slane %v4447_v53, 1  ;;  %v3924_v49 = vld [vmem:[#allocation8 + $0x308] sm:$0xff]  }
 0x179   :  { %v1257_v5 = vrot.slane %v4444_v51, 2  ;;  %v1494_v6 = vrot.slane %v1492_v60, 6  ;;  %v1497_v54 = vrot.slane %v1495_v56, 7  ;;  %v1250_v1 = vsel %vm163_vm3, %v1247_v0, %v1249_v61 }
 0x17a   :  { %v1192_v57 = vmul.f32 %v1186_v38, %v4449_v58  ;;  %v1230_v8 = vsel %vm127_vm0, %v1225_v28, %v1229_v2  ;;  %v1475_v10 = vshrl.u32 %v1248_v47, 16  ;;  %v1478_v55 = vshll.u32 %v1248_v47, 16 }
 0x17b   :  { %v1466_v11 = vshrl.u32 %v1230_v8, 16  ;;  %v1469_v15 = vshll.u32 %v1230_v8, 16  ;;  %v4459_v17 = vor.u32 %v1257_v5, %v1256_v4  ;;  %v1498_v41 = vor.u32 %v1497_v54, %v1494_v6  ;;  %v3923_v4 = vld [vmem:[#allocation8 + $0x340] sm:$0xff]  }
 0x17c   :  { %v4461_v19 = vpack.c.bf16 %v1192_v57, %v1191_v63  ;;  %v1477_v20 = vrot.slane %v1475_v10, 6  ;;  %v1480_v21 = vrot.slane %v1478_v55, 7  ;;  %v1483_v13 = vshrl.u32 %v1250_v1, 16  ;;  %v3925_v57 = vld [vmem:[#allocation8 + $0x2c8] sm:$0xff]  }
 0x17d   :  { %v1468_v48 = vrot.slane %v1466_v11, 6  ;;  %v1471_v33 = vrot.slane %v1469_v15, 7  ;;  %v1259_v0 = vsel %vm171_vm2, %v1255_v42, %v4459_v17  ;;  %v1486_v32 = vshll.u32 %v1250_v1, 16  ;;  %v3927_v11 = vld [vmem:[#allocation8 + $0x310] sm:$0xff]  }
 0x17e   :  { %1198 = vst [vmem:[#allocation2 + $0x18] sm:$0xff] %v4461_v19  ;;  %v1500_v22 = vshrl.u32 %v1259_v0, 16  ;;  %v1503_v23 = vshll.u32 %v1259_v0, 16  ;;  %v1481_v24 = vor.u32 %v1480_v21, %v1477_v20  ;;  %v1485_v25 = vrot.slane %v1483_v13, 6  ;;  %v3926_v0 = vld [vmem:[#allocation8 + $0x348] sm:$0xff]  }
 0x17f   :  { %v4466_v26 = vor.u32 %v1471_v33, %v1468_v48  ;;  %v1488_v27 = vrot.slane %v1486_v32, 7  ;;  %v4469_v7 = vor.u32 %v4447_v53, %v1229_v2  ;;  %v1559_v28 = vrot.slane %v4447_v53, 6 }
 0x180   :  { %v1502_v39 = vrot.slane %v1500_v22, 6  ;;  %v1505_v40 = vrot.slane %v1503_v23, 7  ;;  %v1560_v42 = vrot.slane %v4444_v51, 7  ;;  %v1261_v45 = vshrl.u32 %v4461_v19, 16 }
 0x181   :  { %v1473_v46 = vsel %vm365_vm1, %v1464_v37, %v4466_v26  ;;  %v1489_v47 = vor.u32 %v1488_v27, %v1485_v25  ;;  %v1264_v50 = vshll.u32 %v4461_v19, 16  ;;  %v4480_v60 = vrot.slane %v4461_v19, 1  ;;  %v3928_v25 = vld [vmem:[#allocation8 + $0x2d0] sm:$0xff]  }
 0x182   :  { %2064 = vmatprep.mubr.bf16.mxu0 %v1473_v46  ;;  %v4482_v56 = vor.u32 %v1505_v40, %v1502_v39  ;;  %v4484_v63 = vor.u32 %v1560_v42, %v1559_v28  ;;  %v1263_v38 = vrot.slane %v1261_v45, 1  ;;  %v1281_v2 = vshrl.u32 %v4472_v31, 16  ;;  %v3930_v40 = vld [vmem:[#allocation8 + $0x318] sm:$0xff]  }
 0x183   :  { %2065 = vmatmul.mubr.bf16.vlgmr.msra.gmra.mrb[24].mxu0 %v1456_v12  ;;  %v1490_v37 = vsel %vm365_vm1, %v1481_v24, %v1489_v47  ;;  %v1266_v5 = vrot.slane %v1264_v50, 2  ;;  %v1252_v6 = vsel %vm163_vm3, %v1249_v61, %v4480_v60  ;;  %v1284_v54 = vshll.u32 %v4472_v31, 16 }
 0x184   :  { %3582 = vmatpush3.bf16.msra.mxu0 %v3922_v34  ;;  %v1507_v1 = vsel %vm365_vm1, %v1498_v41, %v4482_v56  ;;  %v4500_v12 = vsel %vm365_vm1, %v4433_v35, %v4484_v63  ;;  %v1573_v8 = vshrl.u32 %v1252_v6, 16  ;;  %v1576_v10 = vshll.u32 %v1252_v6, 16  ;;  %v3929_v6 = vld [vmem:[#allocation8 + $0x350] sm:$0xff]  }
 0x185   :  { %2121 = vmatprep.mubr.bf16.mxu1 %v1507_v1  ;;  %3583 = vmatprep.subr.bf16.mxu0 %v3924_v49  ;;  %v1202_v55 = vld [vmem:[#allocation2 + $0x18] sm:$0x7f]  ;;  %v1267_v15 = vor.u32 %v1266_v5, %v1263_v38  ;;  %v1283_v61 = vrot.slane %v1281_v2, 2  ;;  %v1286_v20 = vrot.slane %v1284_v54, 3  ;;  %v1291_v21 = vrot.slane %v4447_v53, 2 }
 0x186   :  { %2122 = vmatmul.mubr.bf16.vlgmr.msra.gmra.mrb[24].mxu1 %v1490_v37  ;;  %v1235_v13 = vshll.u32 %v1202_v55, 16  ;;  %v1239_v41 = vshrl.u32 %v1202_v55, 16  ;;  %v1575_v48 = vrot.slane %v1573_v8, 6  ;;  %v1578_v33 = vrot.slane %v1576_v10, 7  ;;  %v3931_v10 = vld [vmem:[#allocation8 + $0x2d8] sm:$0xff]  }
 0x187   :  { %3791 = vmatpush3.bf16.msra.mxu1 %v3923_v4  ;;  %v1268_v35 = vsel %vm171_vm2, %v4459_v17, %v1267_v15  ;;  %v1640_v32 = vshrl.u32 %v1267_v15, 16  ;;  %v1643_v22 = vshll.u32 %v1267_v15, 16  ;;  %v4505_v23 = vor.u32 %v1286_v20, %v1283_v61 }
 0x188   :  { %3584 = vmatpush3.bf16.msra.mxu0 %v3925_v57  ;;  %3792 = vmatprep.subr.bf16.mxu1 %v4136_v52  ;;  %v1237_v24 = vrot.slane %v1235_v13, 1  ;;  %v1582_v53 = vshrl.u32 %v1268_v35, 16  ;;  %v1585_v27 = vshll.u32 %v1268_v35, 16  ;;  %v4508_v28 = vor.u32 %v1578_v33, %v1575_v48  ;;  %v3933_v48 = vld [vmem:[#allocation8 + $0x320] sm:$0xff]  }
 0x189   :  { %3585 = vmatprep.subr.bf16.mxu0 %v3927_v11  ;;  %v1642_v34 = vrot.slane %v1640_v32, 6  ;;  %v1645_v39 = vrot.slane %v1643_v22, 7  ;;  %v1617_v42 = vrot.slane %v1239_v41, 6  ;;  %v1618_v46 = vrot.slane %v1235_v13, 7 }
 0x18a   :  { %v1238_v17 = vsel %vm127_vm0, %v4469_v7, %v1237_v24  ;;  %v1241_v49 = vor.u32 %v1239_v41, %v1237_v24  ;;  %v1584_v38 = vrot.slane %v1582_v53, 6  ;;  %v1587_v2 = vrot.slane %v1585_v27, 7  ;;  %v3934_v24 = vld [vmem:[#allocation8 + $0x2e0] sm:$0xff]  }
 0x18b   :  { %3793 = vmatpush3.bf16.msra.mxu1 %v3926_v0  ;;  %v1564_v37 = vshrl.u32 %v1238_v17, 16  ;;  %v1567_v4 = vshll.u32 %v1238_v17, 16  ;;  %v1580_v5 = vsel %vm365_vm1, %v1489_v47, %v4508_v28  ;;  %v1646_v54 = vor.u32 %v1645_v39, %v1642_v34  ;;  %v3932_v0 = vld [vmem:[#allocation8 + $0x358] sm:$0xff]  }
 0x18c   :  { %3586 = vmatpush3.bf16.msra.mxu0 %v3928_v25  ;;  %v1622_v1 = vshrl.u32 %v1241_v49, 16  ;;  %v1625_v57 = vshll.u32 %v1241_v49, 16  ;;  %v1588_v8 = vor.u32 %v1587_v2, %v1584_v38  ;;  %3794 = vmatprep.subr.bf16.mxu1 %v4136_v52  ;;  %v1619_v55 = vor.u32 %v1618_v46, %v1617_v42  ;;  %v3935_v49 = vld [vmem:[#allocation8 + $0x360] sm:$0xff]  }
 0x18d   :  { %v1566_v7 = vrot.slane %v1564_v37, 6  ;;  %v1569_v11 = vrot.slane %v1567_v4, 7  ;;  %3587 = vmatprep.subr.bf16.mxu0 %v3930_v40  ;;  %v1294_v15 = vrot.slane %v4444_v51, 3  ;;  %v1526_v61 = vshrl.u32 %v4505_v23, 16 }
 0x18e   :  { %v1624_v20 = vrot.slane %v1622_v1, 6  ;;  %v1627_v13 = vrot.slane %v1625_v57, 7  ;;  %v1589_v47 = vsel %vm365_vm1, %v4482_v56, %v1588_v8  ;;  %v1647_v41 = vsel %vm365_vm1, %v1588_v8, %v1646_v54  ;;  %v3939_v54 = vld [vmem:[#allocation8 + $0x330] sm:$0xff]  }
 0x18f   :  { %v1570_v33 = vor.u32 %v1569_v11, %v1566_v7  ;;  %2129 = vmatprep.mubr.bf16.mxu1 %v1589_v47  ;;  %3795 = vmatpush3.bf16.msra.mxu1 %v3929_v6  ;;  %v4522_v35 = vsel %vm365_vm1, %v4484_v63, %v1619_v55  ;;  %v4524_v32 = vor.u32 %v1294_v15, %v1291_v21  ;;  %v1528_v51 = vrot.slane %v1526_v61, 6  ;;  %v3936_v21 = vld [vmem:[#allocation8 + $0x328] sm:$0xff]   ;;  %v3940_v47 = vld [vmem:[#allocation8 + $0x2f0] sm:$0xff]  }
 0x190   :  { %v1628_v22 = vor.u32 %v1627_v13, %v1624_v20  ;;  %2130 = vmatmul.mubr.bf16.gmra.mrb[28].mxu1 %v1580_v5  ;;  %3588 = vmatpush3.bf16.msra.mxu0 %v3931_v10  ;;  %v1529_v56 = vshll.u32 %v4505_v23, 16  ;;  %v1631_v25 = vshrl.u32 %v4480_v60, 16  ;;  %v1634_v53 = vshll.u32 %v4480_v60, 16  ;;  %v3937_v5 = vld [vmem:[#allocation8 + $0x2e8] sm:$0xff]  }
 0x191   :  { %v1571_v27 = vsel %vm365_vm1, %v4466_v26, %v1570_v33  ;;  %2137 = vmatprep.mubr.bf16.mxu1 %v1647_v41  ;;  %3796 = vmatprep.subr.bf16.mxu1 %v4136_v52  ;;  %v1296_v63 = vsel %vm200_vm5, %v4505_v23, %v4524_v32  ;;  %v1274_v34 = vrot.slane %v4435_v36, 2  ;;  %v1509_v39 = vshrl.u32 %v4424_v43, 16  ;;  %v3938_v15 = vld [vmem:[#allocation8 + $0x368] sm:$0xff]  }
 0x192   :  { %2072 = vmatprep.mubr.bf16.mxu0 %v1571_v27  ;;  %v1629_v40 = vsel %vm365_vm1, %v1570_v33, %v1628_v22  ;;  %3589 = vmatprep.subr.bf16.mxu0 %v3933_v48  ;;  %v1531_v60 = vrot.slane %v1529_v56, 7  ;;  %v1534_v42 = vshrl.u32 %v1296_v63, 16  ;;  %v1537_v46 = vshll.u32 %v1296_v63, 16  ;;  %v3941_v27 = vld [vmem:[#allocation8 + $0x370] sm:$0xff]  }
 0x193   :  { %2073 = vmatmul.mubr.bf16.gmra.mrb[28].mxu0 %v4500_v12  ;;  %3797 = vmatpush3.bf16.msra.mxu1 %v3932_v0  ;;  %v1633_v26 = vrot.slane %v1631_v25, 6  ;;  %v1636_v17 = vrot.slane %v1634_v53, 7  ;;  %v1275_v23 = vsel %vm192_vm4, %v4424_v43, %v1274_v34  ;;  %v1511_v38 = vrot.slane %v1509_v39, 6  ;;  %v1210_v53 = vld [vmem:[#allocation2 + $0x20] sm:$0x3] }
 0x194   :  { %2080 = vmatprep.mubr.bf16.mxu0 %v1629_v40  ;;  %3590 = vmatpush3.bf16.msra.mxu0 %v3934_v24  ;;  %v1532_v2 = vor.u32 %v1531_v60, %v1528_v51  ;;  %v1536_v37 = vrot.slane %v1534_v42, 6  ;;  %v1539_v4 = vrot.slane %v1537_v46, 7  ;;  %v1512_v6 = vshll.u32 %v4424_v43, 16  ;;  %v3943_v60 = vld [vmem:[#allocation8 + $0x2f8] sm:$0xff]  }
 0x195   :  { %3798 = vmatprep.subr.bf16.mxu1 %v4136_v52  ;;  %v1637_v12 = vor.u32 %v1636_v17, %v1633_v26  ;;  %3591 = vmatprep.subr.bf16.mxu0 %v3936_v21  ;;  %v1517_v1 = vshrl.u32 %v1275_v23, 16  ;;  %v1520_v57 = vshll.u32 %v1275_v23, 16  ;;  %v1300_v8 = vrot.slane %v1261_v45, 2 }
 0x196   :  { %v4547_v10 = vor.u32 %v1539_v4, %v1536_v37  ;;  %v1514_v55 = vrot.slane %v1512_v6, 7  ;;  %v1303_v7 = vrot.slane %v1264_v50, 3  ;;  %v1317_v11 = vrot.slane %v4472_v31, 3  ;;  %v3942_v31 = vld [vmem:[#allocation8 + $0x338] sm:$0xff]  }
 0x197   :  { %v1638_v43 = vsel %vm365_vm1, %v4508_v28, %v1637_v12  ;;  %3799 = vmatpush3.bf16.msra.mxu1 %v3935_v49  ;;  %v1519_v61 = vrot.slane %v1517_v1, 6  ;;  %v1522_v20 = vrot.slane %v1520_v57, 7  ;;  %v1318_v13 = vrot.slane %v4435_v36, 3  ;;  %v3944_v36 = vld [vmem:[#allocation8 + $0x378] sm:$0xff]  }
 0x198   :  { %v1541_v45 = vsel %vm365_vm1, %v1532_v2, %v4547_v10  ;;  %2138 = vmatmul.mubr.bf16.gmra.mrb[32].mxu1 %v1638_v43  ;;  %3592 = vmatpush3.bf16.msra.mxu0 %v3937_v5  ;;  %v1515_v41 = vor.u32 %v1514_v55, %v1511_v38  ;;  %v1304_v48 = vor.u32 %v1303_v7, %v1300_v8  ;;  %v1543_v50 = vshrl.u32 %v1317_v11, 16 }
 0x199   :  { %3800 = vmatprep.subr.bf16.mxu1 %v4136_v52  ;;  %3593 = vmatprep.subr.bf16.mxu0 %v3939_v54  ;;  %v1523_v28 = vor.u32 %v1522_v20, %v1519_v61  ;;  %v1319_v33 = vsel %vm238_vm6, %v1317_v11, %v1318_v13  ;;  %v1546_v0 = vshll.u32 %v1317_v11, 16  ;;  %v1276_v51 = vrot.slane %v4461_v19, 2 }
 0x19a   :  { %v1305_v22 = vsel %vm200_vm5, %v4524_v32, %v1304_v48  ;;  %3806 = vmatprep.mubr.msk.bf16.mxu1 %vm4137_vm7, %v4136_v52  ;;  %v1545_v24 = vrot.slane %v1543_v50, 6  ;;  %v1551_v56 = vshrl.u32 %v1319_v33, 16  ;;  %v1554_v25 = vshll.u32 %v1319_v33, 16 }
 0x19b   :  { %2081 = vmatmul.mubr.bf16.gmra.mrb[32].mxu0 %v4522_v35  ;;  %3801 = vmatpush3.bf16.msra.mxu1 %v3938_v15  ;;  %v1524_v63 = vsel %vm365_vm1, %v1515_v41, %v1523_v28  ;;  %v1600_v21 = vshrl.u32 %v1305_v22, 16  ;;  %v1603_v39 = vshll.u32 %v1305_v22, 16  ;;  %v1548_v40 = vrot.slane %v1546_v0, 7 }
 0x19c   :  { %2178 = vmatprep.mubr.bf16.mxu0 %v1541_v45  ;;  %3594 = vmatpush3.bf16.msra.mxu0 %v3940_v47  ;;  %v1553_v32 = vrot.slane %v1551_v56, 6  ;;  %v1556_v42 = vrot.slane %v1554_v25, 7  ;;  %v1277_v46 = vsel %vm192_vm4, %v1274_v34, %v1276_v51  ;;  %v1314_v35 = vsel %vm200_vm5, %v1304_v48, %v1313_v18  ;;  %v3946_v56 = vld [vmem:[#allocation9] sm:$0xff]  }
 0x19d   :  { %3802 = vmatprep.subr.bf16.mxu1 %v4136_v52  ;;  %3595 = vmatprep.subr.bf16.mxu0 %v3942_v31  ;;  %v1602_v26 = vrot.slane %v1600_v21, 6  ;;  %v1605_v17 = vrot.slane %v1603_v39, 7  ;;  %v1591_v49 = vshrl.u32 %v1277_v46, 16  ;;  %v1322_v23 = vrot.slane %v1210_v53, 3  ;;  %v3947_v25 = vld [vmem:[#allocation9 + $0xc0] sm:$0xff]   ;;  %v3950_v21 = vld [vmem:[#allocation9 + $0x8] sm:$0xff]  }
 0x19e   :  { %v1549_v38 = vor.u32 %v1548_v40, %v1545_v24  ;;  %v1594_v2 = vshll.u32 %v1277_v46, 16  ;;  %v1658_v37 = vshrl.u32 %v1314_v35, 16  ;;  %v1661_v4 = vshll.u32 %v1314_v35, 16  ;;  %v3945_v24 = vld [vmem:[#allocation9 + $0x40] sm:$0xff]   ;;  %v3952_v39 = vld [vmem:[#allocation9 + $0x88] sm:$0xff]   ;;  %v3953_v40 = vld [vmem:[#allocation9 + $0x50] sm:$0xff]  }
 0x19f   :  { %3803 = vmatpush3.bf16.msra.mxu1 %v3941_v27  ;;  %v1606_v5 = vor.u32 %v1605_v17, %v1602_v26  ;;  %v1593_v34 = vrot.slane %v1591_v49, 6  ;;  %v1320_v6 = vrot.slane %v4461_v19, 3  ;;  %v1279_v62 = vsel %vm192_vm4, %v1276_v51, %v1278_v14  ;;  %v3948_v53 = vld [vmem:[#allocation9 + $0x80] sm:$0xff]   ;;  %v3949_v27 = vld [vmem:[#allocation9 + $0x48] sm:$0xff]   ;;  %v3958_v46 = vld [vmem:[#allocation9 + $0x18] sm:$0xff]  }
 0x1a0   :  { %3596 = vmatpush3.bf16.msra.mxu0 %v3943_v60  ;;  %3804 = vmatprep.subr.bf16.mxu1 %v4136_v52  ;;  %v1557_v59 = vor.u32 %v1556_v42, %v1553_v32  ;;  %v1596_v18 = vrot.slane %v1594_v2, 7  ;;  %v1660_v12 = vrot.slane %v1658_v37, 6  ;;  %v1663_v54 = vrot.slane %v1661_v4, 7  ;;  %v3954_v60 = vld [vmem:[#allocation9 + $0x10] sm:$0xff]   ;;  %v3957_v32 = vld [vmem:[#allocation9 + $0x58] sm:$0xff]   ;;  %v3961_v17 = vld [vmem:[#allocation9 + $0x60] sm:$0xff]  }
 0x1a1   :  { %v1607_v1 = vsel %vm365_vm1, %v4547_v10, %v1606_v5  ;;  %v1321_v57 = vsel %vm238_vm6, %v1318_v13, %v1320_v6  ;;  %v1649_v8 = vshrl.u32 %v1279_v62, 16  ;;  %v1652_v55 = vshll.u32 %v1279_v62, 16  ;;  %3626 = vmatprep.subr.bf16.mxu0 %v3945_v24  ;;  %v3956_v42 = vld [vmem:[#allocation9 + $0x90] sm:$0xff]   ;;  %v3959_v35 = vld [vmem:[#allocation9 + $0xd8] sm:$0xff]   ;;  %v3962_v49 = vld [vmem:[#allocation9 + $0x20] sm:$0xff]  }
 0x1a2   :  { %v1597_v7 = vor.u32 %v1596_v18, %v1593_v34  ;;  %v1664_v19 = vor.u32 %v1663_v54, %v1660_v12  ;;  %v1609_v11 = vshrl.u32 %v1321_v57, 16  ;;  %v1612_v16 = vshll.u32 %v1321_v57, 16  ;;  %v3960_v26 = vld [vmem:[#allocation9 + $0x98] sm:$0xff]   ;;  %v3964_v2 = vld [vmem:[#allocation9 + $0xa0] sm:$0xff]   ;;  %v3966_v37 = vld [vmem:[#allocation9 + $0x28] sm:$0xff]  }
 0x1a3   :  { %3805 = vmatpush3.bf16.msra.mxu1 %v3944_v36  ;;  %2179 = vmatmul.mubr.bf16.vlgmr.msra.gmra.mrb[36].mxu0 %v1524_v63  ;;  %v1651_v14 = vrot.slane %v1649_v8, 6  ;;  %v1654_v43 = vrot.slane %v1652_v55, 7  ;;  %v1323_v15 = vsel %vm238_vm6, %v1320_v6, %v1322_v23  ;;  %v1558_v13 = vsel %vm365_vm1, %v1549_v38, %v1557_v59  ;;  %v3951_v63 = vld [vmem:[#allocation9 + $0xc8] sm:$0xff]   ;;  %v3963_v23 = vld [vmem:[#allocation9 + $0xe0] sm:$0xff]   ;;  %v3969_v36 = vld [vmem:[#allocation9 + $0x70] sm:$0xff]  }
 0x1a4   :  { %2186 = vmatprep.mubr.bf16.mxu0 %v1607_v1  ;;  %v1598_v61 = vsel %vm365_vm1, %v1523_v28, %v1597_v7  ;;  %v1665_v20 = vsel %vm365_vm1, %v1606_v5, %v1664_v19  ;;  %v1611_v10 = vrot.slane %v1609_v11, 6  ;;  %v1614_v45 = vrot.slane %v1612_v16, 7  ;;  %3660 = vmatprep.subr.bf16.mxu1 %v3947_v25  ;;  %v3965_v38 = vld [vmem:[#allocation9 + $0x68] sm:$0xff]   ;;  %v3970_v34 = vld [vmem:[#allocation9 + $0x30] sm:$0xff]   ;;  %v3973_v62 = vld [vmem:[#allocation9 + $0x78] sm:$0xff]  }
 0x1a5   :  { %v1655_v47 = vor.u32 %v1654_v43, %v1651_v14  ;;  %v1667_v41 = vshrl.u32 %v1323_v15, 16  ;;  %v1670_v48 = vshll.u32 %v1323_v15, 16  ;;  %3627 = vmatpush3.bf16.msra.mxu0 %v3946_v56  ;;  %v3967_v4 = vld [vmem:[#allocation9 + $0xe8] sm:$0xff]   ;;  %v3971_v6 = vld [vmem:[#allocation9 + $0xf0] sm:$0xff]   ;;  %v3974_v18 = vld [vmem:[#allocation9 + $0x38] sm:$0xff]  }
 0x1a6   :  { %3807 = vmatmul.mubr.bf16.vlgmr.msra.gmra.mrb[36].mxu1 %v1558_v13  ;;  %v1615_v50 = vor.u32 %v1614_v45, %v1611_v10  ;;  %3628 = vmatprep.subr.bf16.mxu0 %v3949_v27  ;;  %v3968_v5 = vld [vmem:[#allocation9 + $0xa8] sm:$0xff]   ;;  %v3975_v12 = vld [vmem:[#allocation9 + $0xf8] sm:$0xff]   ;;  %v3977_v54 = vld [vmem:[#allocation9 + $0x140] sm:$0xff]  }
 0x1a7   :  { %3810 = vmatprep.mubr.msk.bf16.mxu1 %vm4137_vm7, %v4136_v52  ;;  %v1656_v31 = vsel %vm365_vm1, %v1597_v7, %v1655_v47  ;;  %v1669_v33 = vrot.slane %v1667_v41, 6  ;;  %v1672_v0 = vrot.slane %v1670_v48, 7  ;;  %3661 = vmatpush3.bf16.msra.mxu1 %v3948_v53  ;;  %v3976_v1 = vld [vmem:[#allocation9 + $0xb8] sm:$0xff]   ;;  %v3979_v57 = vld [vmem:[#allocation9 + $0x1c0] sm:$0xff]   ;;  %v3278_v55 = vld [vmem:[%s4753_s3 + $0x1] ss:$0 sm:$0xff] }
 0x1a8   :  { %v1616_v28 = vsel %vm365_vm1, %v1557_v59, %v1615_v50  ;;  %3662 = vmatprep.subr.bf16.mxu1 %v3951_v63  ;;  %v3972_v59 = vld [vmem:[#allocation9 + $0xb0] sm:$0xff]  }
 0x1a9   :  { %v1673_v51 = vor.u32 %v1672_v0, %v1669_v33  ;;  %3629 = vmatpush3.bf16.msra.mxu0 %v3950_v21 }
 0x1aa   :  { %3630 = vmatprep.subr.bf16.mxu0 %v3953_v40 }
 0x1ab   :  { %2187 = vmatmul.mubr.bf16.gmra.mrb[40].mxu0 %v1598_v61  ;;  %v1674_v22 = vsel %vm365_vm1, %v1615_v50, %v1673_v51  ;;  %3663 = vmatpush3.bf16.msra.mxu1 %v3952_v39 }
 0x1ac   :  { %2194 = vmatprep.mubr.bf16.mxu0 %v1665_v20 }
 0x1ad   :  { %3631 = vmatpush3.bf16.msra.mxu0 %v3954_v60 }
 0x1ae   :  { %3811 = vmatmul.mubr.bf16.gmra.mrb[40].mxu1 %v1616_v28  ;;  %3632 = vmatprep.subr.bf16.mxu0 %v3957_v32 }
 0x1af   :  { %3814 = vmatprep.mubr.msk.bf16.mxu1 %vm4137_vm7, %v4136_v52  ;;  %v3955_v52 = vld [vmem:[#allocation9 + $0xd0] sm:$0xff]  }
 0x1b0   :  { %3664 = vmatprep.subr.bf16.mxu1 %v3955_v52 }
 0x1b1   :  { %3665 = vmatpush3.bf16.msra.mxu1 %v3956_v42  ;;  %3633 = vmatpush3.bf16.msra.mxu0 %v3958_v46 }
 0x1b2   :  { %3666 = vmatprep.subr.bf16.mxu1 %v3959_v35  ;;  %3634 = vmatprep.subr.bf16.mxu0 %v3961_v17 }
 0x1b3   :  { %2195 = vmatmul.mubr.bf16.gmra.mrb[44].mxu0 %v1656_v31 }
 0x1b5   :  { %3667 = vmatpush3.bf16.msra.mxu1 %v3960_v26  ;;  %3635 = vmatpush3.bf16.msra.mxu0 %v3962_v49 }
 0x1b6   :  { %3815 = vmatmul.mubr.bf16.gmra.mrb[44].mxu1 %v1674_v22  ;;  %3668 = vmatprep.subr.bf16.mxu1 %v3963_v23 }
 0x1b7   :  { %3636 = vmatprep.subr.bf16.mxu0 %v3965_v38 }
 0x1b9   :  { %3669 = vmatpush3.bf16.msra.mxu1 %v3964_v2  ;;  %3637 = vmatpush3.bf16.msra.mxu0 %v3966_v37 }
 0x1ba   :  { %3670 = vmatprep.subr.bf16.mxu1 %v3967_v4  ;;  %3638 = vmatprep.subr.bf16.mxu0 %v3969_v36 }
 0x1bd   :  { %3671 = vmatpush3.bf16.msra.mxu1 %v3968_v5  ;;  %3639 = vmatpush3.bf16.msra.mxu0 %v3970_v34 }
 0x1be   :  { %3672 = vmatprep.subr.bf16.mxu1 %v3971_v6  ;;  %3640 = vmatprep.subr.bf16.mxu0 %v3973_v62 }
 0x1c1   :  { %3673 = vmatpush3.bf16.msra.mxu1 %v3972_v59  ;;  %3641 = vmatpush3.bf16.msra.mxu0 %v3974_v18 }
 0x1c2   :  { %3674 = vmatprep.subr.bf16.mxu1 %v3975_v12  ;;  %3694 = vmatprep.subr.bf16.mxu0 %v3977_v54 }
 0x1c5   :  { %3675 = vmatpush3.bf16.msra.mxu1 %v3976_v1 }
 0x1c6   :  { %3728 = vmatprep.subr.bf16.mxu1 %v3979_v57 }
 0x256   :  { %v3529_v8 = vpop.f32.mrb[24].mxu0 }
 0x257   :  { %v3530_v7 = vpop.f32.mrb[25].mxu0 }
 0x258   :  { %v3531_v19 = vadd.f32 %v3530_v7, %v3529_v8  ;;  %v3532_v11 = vpop.f32.mrb[26].mxu0 }
 0x259   :  { %v3563_v16 = vpop.f32.mrb[24].mxu1  ;;  %v3533_v14 = vpop.f32.mrb[27].mxu0 }
 0x25a   :  { %v2067_v43 = vadd.f32 %v3531_v19, %v3278_v55  ;;  %v3534_v15 = vadd.f32 %v3533_v14, %v3532_v11  ;;  %v3564_v61 = vpop.f32.mrb[25].mxu1 }
 0x25b   :  { %v3565_v20 = vadd.f32 %v3564_v61, %v3563_v16  ;;  %v3566_v10 = vpop.f32.mrb[26].mxu1 }
 0x25c   :  { %v2070_v45 = vadd.f32 %v3534_v15, %v3278_v55  ;;  %v3567_v13 = vpop.f32.mrb[27].mxu1 }
 0x25d   :  { %v2124_v47 = vadd.f32 %v3565_v20, %v2067_v43  ;;  %v3568_v41 = vadd.f32 %v3567_v13, %v3566_v10 }
 0x25f   :  { %v2127_v48 = vadd.f32 %v3568_v41, %v2070_v45 }
 0x263   :  { %v3569_v50 = vpop.f32.mrb[28].mxu1 }
 0x264   :  { %v3570_v31 = vpop.f32.mrb[29].mxu1 }
 0x265   :  { %v3571_v33 = vadd.f32 %v3570_v31, %v3569_v50  ;;  %v3572_v0 = vpop.f32.mrb[30].mxu1 }
 0x266   :  { %v3535_v28 = vpop.f32.mrb[28].mxu0  ;;  %v3573_v51 = vpop.f32.mrb[31].mxu1 }
 0x267   :  { %v3536_v22 = vpop.f32.mrb[29].mxu0  ;;  %v3574_v24 = vadd.f32 %v3573_v51, %v3572_v0 }
 0x268   :  { %v3537_v56 = vadd.f32 %v3536_v22, %v3535_v28  ;;  %v3538_v25 = vpop.f32.mrb[30].mxu0 }
 0x269   :  { %v3539_v53 = vpop.f32.mrb[31].mxu0 }
 0x26a   :  { %v2075_v27 = vadd.f32 %v3537_v56, %v3278_v55  ;;  %v3540_v63 = vadd.f32 %v3539_v53, %v3538_v25 }
 0x26b   :  { %v3575_v21 = vpop.f32.mrb[32].mxu1 }
 0x26c   :  { %v2078_v39 = vadd.f32 %v3540_v63, %v3278_v55  ;;  %v2132_v40 = vadd.f32 %v3571_v33, %v2075_v27  ;;  %v3576_v60 = vpop.f32.mrb[33].mxu1 }
 0x26d   :  { %v3577_v52 = vadd.f32 %v3576_v60, %v3575_v21  ;;  %v3578_v32 = vpop.f32.mrb[34].mxu1 }
 0x26e   :  { %v2135_v42 = vadd.f32 %v3574_v24, %v2078_v39  ;;  %v3541_v46 = vpop.f32.mrb[32].mxu0  ;;  %v3579_v35 = vpop.f32.mrb[35].mxu1 }
 0x26f   :  { %v3542_v26 = vpop.f32.mrb[33].mxu0  ;;  %v3580_v17 = vadd.f32 %v3579_v35, %v3578_v32 }
 0x270   :  { %v3543_v49 = vadd.f32 %v3542_v26, %v3541_v46  ;;  %v3544_v23 = vpop.f32.mrb[34].mxu0 }
 0x271   :  { %v3545_v38 = vpop.f32.mrb[35].mxu0 }
 0x272   :  { %v2083_v2 = vadd.f32 %v3543_v49, %v3278_v55  ;;  %v3546_v37 = vadd.f32 %v3545_v38, %v3544_v23  ;;  %v4604_v38 = vld [vmem:[#allocation2 + $0x20] sm:$0x1] }
 0x274   :  { %v2086_v4 = vadd.f32 %v3546_v37, %v3278_v55  ;;  %v2140_v36 = vadd.f32 %v3577_v52, %v2083_v2 }
 0x276   :  { %v2143_v5 = vadd.f32 %v3580_v17, %v2086_v4  ;;  %v3597_v34 = vpop.f32.mrb[36].mxu0 }
 0x277   :  { %v3598_v6 = vpop.f32.mrb[37].mxu0 }
 0x278   :  { %v3599_v62 = vadd.f32 %v3598_v6, %v3597_v34  ;;  %v3600_v59 = vpop.f32.mrb[38].mxu0 }
 0x279   :  { %v2237_v18 = vpop.f32.mrb[36].mxu1  ;;  %v3601_v12 = vpop.f32.mrb[39].mxu0 }
 0x27a   :  { %v2181_v54 = vadd.f32 %v3599_v62, %v2124_v47  ;;  %v3602_v1 = vadd.f32 %v3601_v12, %v3600_v59  ;;  %v3808_v57 = vpop.f32.mrb[37].mxu1 }
 0x27b   :  { %v2240_v8 = vpop.f32.mrb[38].mxu1 }
 0x27c   :  { %v2238_v7 = vadd.f32 %v2237_v18, %v2181_v54  ;;  %v2184_v19 = vadd.f32 %v3602_v1, %v2127_v48  ;;  %v3809_v11 = vpop.f32.mrb[39].mxu1 }
 0x27e   :  { %v2260_v16 = vmax.f32 %v2238_v7, 0.0  ;;  %v2241_v14 = vadd.f32 %v2240_v8, %v2184_v19  ;;  %v3603_v43 = vpop.f32.mrb[40].mxu0  ;;  %v3978_v7 = vld [vmem:[#allocation9 + $0x100] sm:$0xff]  }
 0x27f   :  { %v3604_v15 = vpop.f32.mrb[41].mxu0 }
 0x280   :  { %v2261_v55 = vmax.f32 %v2241_v14, 0.0  ;;  %v3605_v61 = vadd.f32 %v3604_v15, %v3603_v43  ;;  %v3606_v20 = vpop.f32.mrb[42].mxu0  ;;  %v2266_v13 = vmul.f32 %v2260_v16, %v4399_v29 }
 0x281   :  { %v2245_v10 = vpop.f32.mrb[40].mxu1  ;;  %v3607_v45 = vpop.f32.mrb[43].mxu0 }
 0x282   :  { %v2267_v41 = vmul.f32 %v2261_v55, %v4401_v30  ;;  %v2189_v47 = vadd.f32 %v3605_v61, %v2132_v40  ;;  %v3608_v50 = vadd.f32 %v3607_v45, %v3606_v20  ;;  %v3812_v31 = vpop.f32.mrb[41].mxu1  ;;  %v3981_v61 = vld [vmem:[#allocation9 + $0x148] sm:$0xff]  }
 0x283   :  { %v2248_v33 = vpop.f32.mrb[42].mxu1  ;;  %v3982_v31 = vld [vmem:[#allocation9 + $0x108] sm:$0xff]  }
 0x284   :  { %v2272_v0 = vpack.c.bf16 %v2267_v41, %v2266_v13  ;;  %v2246_v48 = vadd.f32 %v2245_v10, %v2189_v47  ;;  %v2192_v28 = vadd.f32 %v3608_v50, %v2135_v42  ;;  %v3813_v51 = vpop.f32.mrb[43].mxu1  ;;  %v4600_v42 = vld [vmem:[#allocation2 + $0x20] sm:$0x3]  ;;  %v3980_v47 = vld [vmem:[#allocation9 + $0x180] sm:$0xff]  }
 0x285   :  { %v2356_v18 = vshll.u32 %v4600_v42, 16 }
 0x286   :  { %2275 = vst [vmem:[#allocation2 + $0x8] sm:$0xff] %v2272_v0  ;;  %v2262_v22 = vmax.f32 %v2246_v48, 0.0  ;;  %v2249_v24 = vadd.f32 %v2248_v33, %v2192_v28  ;;  %v3609_v56 = vpop.f32.mrb[44].mxu0  ;;  %v2294_v53 = vshll.u32 %v2272_v0, 16  ;;  %v2292_v2 = vshrl.u32 %v2272_v0, 16  ;;  %v3983_v33 = vld [vmem:[#allocation9 + $0x1c8] sm:$0xff]  }
 0x287   :  { %v3610_v25 = vpop.f32.mrb[45].mxu0  ;;  %v4632_v28 = vrot.slane %v2356_v18, 2  ;;  %v3988_v18 = vld [vmem:[#allocation9 + $0x190] sm:$0xff]  }
 0x288   :  { %v2263_v27 = vmax.f32 %v2249_v24, 0.0  ;;  %v3611_v63 = vadd.f32 %v3610_v25, %v3609_v56  ;;  %v3612_v21 = vpop.f32.mrb[46].mxu0  ;;  %v2268_v30 = vmul.f32 %v2262_v22, %v4414_v3  ;;  %v2296_v35 = vrot.slane %v2294_v53, 1  ;;  %v3985_v22 = vld [vmem:[#allocation9 + $0x150] sm:$0xff]  }
 0x289   :  { %v2253_v29 = vpop.f32.mrb[44].mxu1  ;;  %v3613_v39 = vpop.f32.mrb[47].mxu0  ;;  %v2315_v3 = vshll.u32 %v4604_v38, 16 }
 0x28a   :  { %v2269_v40 = vmul.f32 %v2263_v27, %v4420_v9  ;;  %v2197_v60 = vadd.f32 %v3611_v63, %v2140_v36  ;;  %v3614_v52 = vadd.f32 %v3613_v39, %v3612_v21  ;;  %v3816_v32 = vpop.f32.mrb[45].mxu1  ;;  %v2353_v9 = vshrl.u32 %v4600_v42, 16 }
 0x28b   :  { %v2256_v46 = vpop.f32.mrb[46].mxu1  ;;  %v2297_v62 = vor.u32 %v2296_v35, %v2292_v2  ;;  %v2317_v50 = vrot.slane %v2315_v3, 1  ;;  %v3987_v2 = vld [vmem:[#allocation9 + $0x1d0] sm:$0xff]   ;;  %v3989_v3 = vld [vmem:[#allocation9 + $0x158] sm:$0xff]  }
 0x28c   :  { %v4602_v26 = vpack.c.bf16 %v2269_v40, %v2268_v30  ;;  %v2254_v17 = vadd.f32 %v2253_v29, %v2197_v60  ;;  %v2200_v49 = vadd.f32 %v3614_v52, %v2143_v5  ;;  %v3817_v23 = vpop.f32.mrb[47].mxu1  ;;  %v4630_v48 = vrot.slane %v2353_v9, 1  ;;  %v3984_v29 = vld [vmem:[#allocation9 + $0x188] sm:$0xff]   ;;  %v3986_v52 = vld [vmem:[#allocation9 + $0x110] sm:$0xff]  }
 0x28d   :  { %v2285_v37 = vld [vmem:[#allocation2 + $0x8] sm:$0xfe] }
 0x28e   :  { %v2264_v4 = vmax.f32 %v2254_v17, 0.0  ;;  %v2257_v36 = vadd.f32 %v2256_v46, %v2200_v49  ;;  %v4609_v34 = vshll.u32 %v4602_v26, 16  ;;  %v4612_v6 = vshrl.u32 %v4602_v26, 16  ;;  %v4617_v8 = vld [vmem:[#allocation2 + $0x8] sm:$0xfc] }
 0x28f   :  { %v2337_v59 = vshrl.u32 %v2285_v37, 16  ;;  %v2340_v5 = vshll.u32 %v2285_v37, 16  ;;  %v2326_v57 = vrot.slane %v2285_v37, 1  ;;  %v2327_v14 = vrot.slane %v4602_v26, 1  ;;  %v4643_v25 = vld [vmem:[#allocation2 + $0x8] sm:$0xf8] }
 0x290   :  { %v2265_v12 = vmax.f32 %v2257_v36, 0.0  ;;  %v2301_v54 = vrot.slane %v4609_v34, 1  ;;  %v2344_v1 = vrot.slane %v4612_v6, 1  ;;  %v2345_v16 = vrot.slane %v4609_v34, 2 }
 0x291   :  { %v2339_v19 = vrot.slane %v2337_v59, 1  ;;  %v2342_v11 = vrot.slane %v2340_v5, 2  ;;  %v2270_v43 = vmul.f32 %v2264_v4, %v4438_v44  ;;  %v2377_v45 = vshrl.u32 %v4617_v8, 16 }
 0x292   :  { %v2271_v15 = vmul.f32 %v2265_v12, %v4449_v58  ;;  %v2302_v55 = vsel %vm127_vm0, %v2297_v62, %v2301_v54  ;;  %v2346_v10 = vor.u32 %v2345_v16, %v2344_v1  ;;  %v2380_v13 = vshll.u32 %v4617_v8, 16  ;;  %v3990_v12 = vld [vmem:[#allocation9 + $0x118] sm:$0xff]  }
 0x293   :  { %2996 = vmatprep.mubr.bf16.mxu0 %v2302_v55  ;;  %v2343_v20 = vor.u32 %v2342_v11, %v2339_v19  ;;  %v2328_v58 = vsel %vm163_vm3, %v2326_v57, %v2327_v14  ;;  %v2305_v51 = vor.u32 %v4612_v6, %v2301_v54  ;;  %v4645_v53 = vrot.slane %v2377_v45, 2  ;;  %v3991_v54 = vld [vmem:[#allocation9 + $0x1d8] sm:$0xff]   ;;  %v3993_v19 = vld [vmem:[#allocation9 + $0x160] sm:$0xff]  }
 0x294   :  { %v4626_v41 = vpack.c.bf16 %v2271_v15, %v2270_v43  ;;  %2997 = vmatmul.mubr.bf16.vlgmr.msra.gmra.mrb[48].mxu0 %v2272_v0  ;;  %v4647_v27 = vrot.slane %v2380_v13, 3  ;;  %v2384_v63 = vrot.slane %v4612_v6, 2  ;;  %v2385_v21 = vrot.slane %v4609_v34, 3 }
 0x295   :  { %3695 = vmatpush3.bf16.msra.mxu0 %v3978_v7  ;;  %v2347_v44 = vsel %vm171_vm2, %v2343_v20, %v2346_v10  ;;  %v2359_v32 = vor.u32 %v4632_v28, %v4630_v48  ;;  %v2418_v46 = vshrl.u32 %v4643_v25, 16  ;;  %v2421_v35 = vshll.u32 %v4643_v25, 16 }
 0x296   :  { %2277 = vst [vmem:[#allocation2 + $0x18] sm:$0xff] %v4626_v41  ;;  %3053 = vmatprep.mubr.bf16.mxu1 %v2347_v44  ;;  %3696 = vmatprep.subr.bf16.mxu0 %v3981_v61  ;;  %v4637_v0 = vshll.u32 %v4626_v41, 16  ;;  %v4640_v24 = vshrl.u32 %v4626_v41, 16  ;;  %v2329_v56 = vrot.slane %v4626_v41, 1  ;;  %v2425_v37 = vrot.slane %v4612_v6, 3  ;;  %v3995_v44 = vld [vmem:[#allocation9 + $0x1e0] sm:$0xff]  }
 0x297   :  { %3054 = vmatmul.mubr.bf16.vlgmr.msra.gmra.mrb[48].mxu1 %v2328_v58  ;;  %v2386_v9 = vor.u32 %v2385_v21, %v2384_v63  ;;  %v2426_v4 = vrot.slane %v4609_v34, 4  ;;  %v2383_v6 = vor.u32 %v4647_v27, %v4645_v53  ;;  %v2420_v34 = vrot.slane %v2418_v46, 3  ;;  %v4000_v27 = vld [vmem:[#allocation9 + $0x1a8] sm:$0xff]   ;;  %v4002_v63 = vld [vmem:[#allocation9 + $0x130] sm:$0xff]  }
 0x298   :  { %3729 = vmatpush3.bf16.msra.mxu1 %v3980_v47  ;;  %v2309_v39 = vrot.slane %v4637_v0, 1  ;;  %v2348_v30 = vrot.slane %v4640_v24, 1  ;;  %v2349_v40 = vrot.slane %v4637_v0, 2  ;;  %v2330_v60 = vsel %vm163_vm3, %v2327_v14, %v2329_v56  ;;  %v4003_v21 = vld [vmem:[#allocation9 + $0x1f0] sm:$0xff]  }
 0x299   :  { %3697 = vmatpush3.bf16.msra.mxu0 %v3982_v31  ;;  %3730 = vmatprep.subr.bf16.mxu1 %v3983_v33  ;;  %v2388_v36 = vrot.slane %v4640_v24, 2  ;;  %v2389_v62 = vrot.slane %v4637_v0, 3  ;;  %v2367_v1 = vrot.slane %v4602_v26, 2  ;;  %v2429_v7 = vrot.slane %v4640_v24, 3  ;;  %v3997_v31 = vld [vmem:[#allocation9 + $0x168] sm:$0xff]  }
 0x29a   :  { %v2310_v17 = vsel %vm127_vm0, %v2305_v51, %v2309_v39  ;;  %3698 = vmatprep.subr.bf16.mxu0 %v3985_v22  ;;  %v2313_v49 = vor.u32 %v4640_v24, %v2309_v39  ;;  %v2350_v23 = vor.u32 %v2349_v40, %v2348_v30  ;;  %v2407_v11 = vrot.slane %v4602_v26, 3  ;;  %v3996_v51 = vld [vmem:[#allocation9 + $0x1a0] sm:$0xff]   ;;  %v3999_v22 = vld [vmem:[#allocation9 + $0x1e8] sm:$0xff]   ;;  %v4001_v24 = vld [vmem:[#allocation9 + $0x170] sm:$0xff]  }
 0x29b   :  { %3004 = vmatprep.mubr.bf16.mxu0 %v2310_v17  ;;  %v4673_v57 = vor.u32 %v2389_v62, %v2388_v36  ;;  %v2430_v16 = vrot.slane %v4637_v0, 4  ;;  %v2369_v14 = vrot.slane %v4626_v41, 2  ;;  %v2409_v43 = vrot.slane %v4626_v41, 3  ;;  %v3998_v0 = vld [vmem:[#allocation9 + $0x128] sm:$0xff]   ;;  %v4004_v39 = vld [vmem:[#allocation9 + $0x1b0] sm:$0xff]   ;;  %v4006_v30 = vld [vmem:[#allocation9 + $0x138] sm:$0xff]  }
 0x29c   :  { %3731 = vmatpush3.bf16.msra.mxu1 %v3984_v29  ;;  %3005 = vmatmul.mubr.bf16.gmra.mrb[52].mxu0 %v4602_v26  ;;  %v2318_v59 = vsel %vm127_vm0, %v2313_v49, %v2317_v50  ;;  %v2351_v5 = vsel %vm171_vm2, %v2346_v10, %v2350_v23  ;;  %v2360_v15 = vsel %vm171_vm2, %v2350_v23, %v2359_v32  ;;  %v2423_v55 = vrot.slane %v2421_v35, 4  ;;  %v3992_v10 = vld [vmem:[#allocation9 + $0x198] sm:$0xff]   ;;  %v3994_v50 = vld [vmem:[#allocation9 + $0x120] sm:$0xff]   ;;  %v2288_v40 = vld [vmem:[#allocation2 + $0x20] sm:$0x7] }
 0x29d   :  { %3699 = vmatpush3.bf16.msra.mxu0 %v3986_v52  ;;  %3012 = vmatprep.mubr.bf16.mxu0 %v2318_v59  ;;  %v2427_v61 = vor.u32 %v2426_v4, %v2425_v37  ;;  %v4683_v20 = vsel %vm200_vm5, %v2386_v9, %v4673_v57  ;;  %v4685_v45 = vor.u32 %v2430_v16, %v2429_v7  ;;  %v2331_v58 = vrot.slane %v4604_v38, 1  ;;  %v4005_v29 = vld [vmem:[#allocation9 + $0x178] sm:$0xff]   ;;  %v2290_v35 = vld [vmem:[#allocation2 + $0x20] sm:$0xf] }
 0x29e   :  { %3061 = vmatprep.mubr.bf16.mxu1 %v2351_v5  ;;  %3732 = vmatprep.subr.bf16.mxu1 %v3987_v2  ;;  %v4692_v13 = vsel %vm192_vm4, %v2367_v1, %v2369_v14  ;;  %v4699_v47 = vsel %vm238_vm6, %v2407_v11, %v2409_v43  ;;  %v2424_v48 = vor.u32 %v2423_v55, %v2420_v34  ;;  %v4008_v52 = vld [vmem:[#allocation9 + $0x1b8] sm:$0xff]   ;;  %v2393_v32 = vshrl.u32 %v2288_v40, 16 }
 0x29f   :  { %3062 = vmatmul.mubr.bf16.gmra.mrb[52].mxu1 %v2330_v60  ;;  %3700 = vmatprep.subr.bf16.mxu0 %v3989_v3  ;;  %v2432_v33 = vsel %vm2416_vm8, %v2427_v61, %v4685_v45  ;;  %v2387_v28 = vsel %vm200_vm5, %v2383_v6, %v2386_v9  ;;  %v2332_v38 = vsel %vm163_vm3, %v2329_v56, %v2331_v58  ;;  %v4007_v56 = vld [vmem:[#allocation9 + $0x1f8] sm:$0xff]   ;;  %v2366_v60 = vrot.slane %v4617_v8, 2 }
 0x2a0   :  { %3733 = vmatpush3.bf16.msra.mxu1 %v3988_v18  ;;  %3069 = vmatprep.mubr.bf16.mxu1 %v2360_v15  ;;  %v2428_v53 = vsel %vm2416_vm8, %v2424_v48, %v2427_v61  ;;  %v2396_v46 = vshll.u32 %v2288_v40, 16  ;;  %v2406_v17 = vrot.slane %v4643_v25, 3  ;;  %v2434_v23 = vshrl.u32 %v2290_v35, 16 }
 0x2a1   :  { %3701 = vmatpush3.bf16.msra.mxu0 %v3990_v12  ;;  %3734 = vmatprep.subr.bf16.mxu1 %v3991_v54  ;;  %v2368_v49 = vsel %vm192_vm4, %v2366_v60, %v2367_v1  ;;  %v2437_v2 = vshll.u32 %v2290_v35, 16  ;;  %v2395_v37 = vrot.slane %v2393_v32, 2  ;;  %v2371_v26 = vrot.slane %v4600_v42, 2  ;;  %v3335_v54 = vld [vmem:[%s4755_s5] ss:$0 sm:$0xff]  ;;  %s4138_s5 = smov [#allocation11]  }
 0x2a2   :  { %3702 = vmatprep.subr.bf16.mxu0 %v3993_v19  ;;  %v2398_v3 = vrot.slane %v2396_v46, 3  ;;  %v2408_v8 = vsel %vm238_vm6, %v2406_v17, %v2407_v11  ;;  %v2436_v9 = vrot.slane %v2434_v23, 3  ;;  %v2411_v5 = vrot.slane %v2288_v40, 3  ;;  %s3203_s27 = sshll.u32 %s4138_s5, 4  ;;  %s3204_s27 = int_to_ptr.vmem [resolvable:$true] %s3203_s27 }
 0x2a3   :  { %v2439_v4 = vrot.slane %v2437_v2, 4  ;;  %v2372_v18 = vsel %vm192_vm4, %v2369_v14, %v2371_v26  ;;  %s4097_s28 = scalar_lea.vmem %s3204_s27, 768  ;;  %p4102_p5 = scmp.lt.s32.totalorder %s3204_s27, %s3204_s27 }
 0x2a4   :  { %3735 = vmatpush3.bf16.msra.mxu1 %v3992_v10  ;;  %3013 = vmatmul.mubr.bf16.gmra.mrb[56].mxu0 %v4626_v41  ;;  %v2399_v25 = vor.u32 %v2398_v3, %v2395_v37  ;;  %v2412_v6 = vsel %vm238_vm6, %v2409_v43, %v2411_v5  ;;  %p4098_p4 = scmp.ne.s32.totalorder %s3204_s27, %s4097_s28  ;;  %p4103_p6 = scmp.lt.s32.totalorder %s4097_s28, %s4097_s28 }
 0x2a5   :  { %3703 = vmatpush3.bf16.msra.mxu0 %v3994_v50  ;;  %3110 = vmatprep.mubr.bf16.mxu0 %v2387_v28  ;;  %v2440_v36 = vor.u32 %v2439_v4, %v2436_v9 }
 0x2a6   :  { %3736 = vmatprep.subr.bf16.mxu1 %v3995_v44  ;;  %3704 = vmatprep.subr.bf16.mxu0 %v3997_v31  ;;  %v2400_v62 = vsel %vm200_vm5, %v4673_v57, %v2399_v25  ;;  %p4104_p7 = por %p4103_p6, %p4102_p5 }
 0x2a7   :  { %3070 = vmatmul.mubr.bf16.gmra.mrb[56].mxu1 %v2332_v38  ;;  %v2441_v59 = vsel %vm2416_vm8, %v4685_v45, %v2440_v36 }
 0x2a8   :  { %3737 = vmatpush3.bf16.msra.mxu1 %v3996_v51  ;;  %3167 = vmatprep.mubr.bf16.mxu1 %v2428_v53  ;;  %p4105_p8 = pnand %p4104_p7, %p4098_p4 }
 0x2a9   :  { %3705 = vmatpush3.bf16.msra.mxu0 %v3998_v0  ;;  %3738 = vmatprep.subr.bf16.mxu1 %v3999_v22 }
 0x2aa   :  { %3706 = vmatprep.subr.bf16.mxu0 %v4001_v24 }
 0x2ac   :  { %3739 = vmatpush3.bf16.msra.mxu1 %v4000_v27 }
 0x2ad   :  { %3707 = vmatpush3.bf16.msra.mxu0 %v4002_v63  ;;  %3740 = vmatprep.subr.bf16.mxu1 %v4003_v21 }
 0x2ae   :  { %3708 = vmatprep.subr.bf16.mxu0 %v4005_v29 }
 0x2b0   :  { %3741 = vmatpush3.bf16.msra.mxu1 %v4004_v39 }
 0x2b1   :  { %3709 = vmatpush3.bf16.msra.mxu0 %v4006_v30  ;;  %3742 = vmatprep.subr.bf16.mxu1 %v4007_v56 }
 0x2b4   :  { %3743 = vmatpush3.bf16.msra.mxu1 %v4008_v52  ;;  %3111 = vmatmul.mubr.bf16.vlgmr.msra.gmra.mrb[60].mxu0 %v2368_v49 }
 0x2b5   :  { %3118 = vmatprep.mubr.bf16.mxu0 %v4683_v20 }
 0x2b7   :  { %3168 = vmatmul.mubr.bf16.vlgmr.msra.gmra.mrb[60].mxu1 %v2408_v8 }
 0x2b8   :  { %3175 = vmatprep.mubr.bf16.mxu1 %v2432_v33 }
 0x2bc   :  { %3119 = vmatmul.mubr.bf16.gmra.mrb[64].mxu0 %v4692_v13 }
 0x2bd   :  { %3126 = vmatprep.mubr.bf16.mxu0 %v2400_v62 }
 0x2bf   :  { %3176 = vmatmul.mubr.bf16.gmra.mrb[64].mxu1 %v4699_v47 }
 0x2c0   :  { %3183 = vmatprep.mubr.bf16.mxu1 %v2441_v59 }
 0x2c4   :  { %3127 = vmatmul.mubr.bf16.gmra.mrb[68].mxu0 %v2372_v18 }
 0x2c7   :  { %3184 = vmatmul.mubr.bf16.gmra.mrb[68].mxu1 %v2412_v6 }
 0x367   :  { %v3642_v12 = vpop.f32.mrb[48].mxu0 }
 0x368   :  { %v3643_v34 = vpop.f32.mrb[49].mxu0 }
 0x369   :  { %v3644_v1 = vadd.f32 %v3643_v34, %v3642_v12  ;;  %v3645_v42 = vpop.f32.mrb[50].mxu0 }
 0x36a   :  { %v3676_v57 = vpop.f32.mrb[48].mxu1  ;;  %v3646_v7 = vpop.f32.mrb[51].mxu0 }
 0x36b   :  { %v2999_v19 = vadd.f32 %v3644_v1, %v3335_v54  ;;  %v3647_v11 = vadd.f32 %v3646_v7, %v3645_v42  ;;  %v3677_v16 = vpop.f32.mrb[49].mxu1 }
 0x36c   :  { %v3678_v14 = vadd.f32 %v3677_v16, %v3676_v57  ;;  %v3679_v15 = vpop.f32.mrb[50].mxu1 }
 0x36d   :  { %v3002_v55 = vadd.f32 %v3647_v11, %v3335_v54  ;;  %v3680_v41 = vpop.f32.mrb[51].mxu1 }
 0x36e   :  { %v3056_v61 = vadd.f32 %v3678_v14, %v2999_v19  ;;  %v3681_v43 = vadd.f32 %v3680_v41, %v3679_v15 }
 0x36f   :  { %v3648_v20 = vpop.f32.mrb[52].mxu0 }
 0x370   :  { %v3059_v10 = vadd.f32 %v3681_v43, %v3002_v55  ;;  %v3649_v45 = vpop.f32.mrb[53].mxu0 }
 0x371   :  { %v3650_v13 = vadd.f32 %v3649_v45, %v3648_v20  ;;  %v3651_v47 = vpop.f32.mrb[54].mxu0 }
 0x372   :  { %v3682_v50 = vpop.f32.mrb[52].mxu1  ;;  %v3652_v44 = vpop.f32.mrb[55].mxu0 }
 0x373   :  { %v3007_v58 = vadd.f32 %v3650_v13, %v3335_v54  ;;  %v3653_v31 = vadd.f32 %v3652_v44, %v3651_v47  ;;  %v3683_v33 = vpop.f32.mrb[53].mxu1 }
 0x374   :  { %v3684_v48 = vadd.f32 %v3683_v33, %v3682_v50  ;;  %v3685_v28 = vpop.f32.mrb[54].mxu1 }
 0x375   :  { %v3010_v51 = vadd.f32 %v3653_v31, %v3335_v54  ;;  %v3686_v0 = vpop.f32.mrb[55].mxu1 }
 0x376   :  { %v3064_v22 = vadd.f32 %v3684_v48, %v3007_v58  ;;  %v3687_v38 = vadd.f32 %v3686_v0, %v3685_v28 }
 0x377   :  { %v3654_v24 = vpop.f32.mrb[56].mxu0 }
 0x378   :  { %v3067_v53 = vadd.f32 %v3687_v38, %v3010_v51  ;;  %v3655_v27 = vpop.f32.mrb[57].mxu0 }
 0x379   :  { %v3656_v63 = vadd.f32 %v3655_v27, %v3654_v24  ;;  %v3657_v21 = vpop.f32.mrb[58].mxu0 }
 0x37a   :  { %v3688_v29 = vpop.f32.mrb[56].mxu1  ;;  %v3658_v39 = vpop.f32.mrb[59].mxu0 }
 0x37b   :  { %v3015_v30 = vadd.f32 %v3656_v63, %v3335_v54  ;;  %v3659_v56 = vadd.f32 %v3658_v39, %v3657_v21  ;;  %v3689_v40 = vpop.f32.mrb[57].mxu1 }
 0x37c   :  { %v3690_v60 = vadd.f32 %v3689_v40, %v3688_v29  ;;  %v3691_v52 = vpop.f32.mrb[58].mxu1 }
 0x37d   :  { %v3018_v32 = vadd.f32 %v3659_v56, %v3335_v54  ;;  %v3692_v46 = vpop.f32.mrb[59].mxu1 }
 0x37e   :  { %v3072_v35 = vadd.f32 %v3690_v60, %v3015_v30  ;;  %v3693_v17 = vadd.f32 %v3692_v46, %v3691_v52 }
 0x380   :  { %v3075_v49 = vadd.f32 %v3693_v17, %v3018_v32 }
 0x387   :  { %v3710_v23 = vpop.f32.mrb[60].mxu0 }
 0x388   :  { %v3711_v2 = vpop.f32.mrb[61].mxu0 }
 0x389   :  { %v3712_v37 = vadd.f32 %v3711_v2, %v3710_v23  ;;  %v3713_v3 = vpop.f32.mrb[62].mxu0 }
 0x38a   :  { %v3744_v8 = vpop.f32.mrb[60].mxu1  ;;  %v3714_v9 = vpop.f32.mrb[63].mxu0 }
 0x38b   :  { %v3113_v4 = vadd.f32 %v3712_v37, %v3056_v61  ;;  %v3715_v25 = vadd.f32 %v3714_v9, %v3713_v3  ;;  %v3745_v36 = vpop.f32.mrb[61].mxu1 }
 0x38c   :  { %v3746_v62 = vadd.f32 %v3745_v36, %v3744_v8  ;;  %v3747_v59 = vpop.f32.mrb[62].mxu1 }
 0x38d   :  { %v3116_v26 = vadd.f32 %v3715_v25, %v3059_v10  ;;  %v3748_v5 = vpop.f32.mrb[63].mxu1 }
 0x38e   :  { %v3170_v18 = vadd.f32 %v3746_v62, %v3113_v4  ;;  %v3749_v6 = vadd.f32 %v3748_v5, %v3747_v59 }
 0x38f   :  { %v3716_v12 = vpop.f32.mrb[64].mxu0 }
 0x390   :  { %3192 = vst [vmem:[#allocation11] sm:$0xff] %v3170_v18  ;;  %v3173_v54 = vadd.f32 %v3749_v6, %v3116_v26  ;;  %v3717_v34 = vpop.f32.mrb[65].mxu0 }
 0x391   :  { %v3718_v1 = vadd.f32 %v3717_v34, %v3716_v12  ;;  %v3719_v42 = vpop.f32.mrb[66].mxu0 }
 0x392   :  { %3193 = vst [vmem:[#allocation11 + $0x8] sm:$0xff] %v3173_v54  ;;  %v3750_v57 = vpop.f32.mrb[64].mxu1  ;;  %v3720_v7 = vpop.f32.mrb[67].mxu0 }
 0x393   :  { %v3121_v19 = vadd.f32 %v3718_v1, %v3064_v22  ;;  %v3721_v11 = vadd.f32 %v3720_v7, %v3719_v42  ;;  %v3751_v16 = vpop.f32.mrb[65].mxu1 }
 0x394   :  { %v3752_v14 = vadd.f32 %v3751_v16, %v3750_v57  ;;  %v3753_v15 = vpop.f32.mrb[66].mxu1 }
 0x395   :  { %v3124_v55 = vadd.f32 %v3721_v11, %v3067_v53  ;;  %v3754_v41 = vpop.f32.mrb[67].mxu1 }
 0x396   :  { %v3178_v61 = vadd.f32 %v3752_v14, %v3121_v19  ;;  %v3755_v43 = vadd.f32 %v3754_v41, %v3753_v15 }
 0x397   :  { %v3722_v20 = vpop.f32.mrb[68].mxu0 }
 0x398   :  { %3194 = vst [vmem:[#allocation11 + $0x10] sm:$0xff] %v3178_v61  ;;  %v3181_v10 = vadd.f32 %v3755_v43, %v3124_v55  ;;  %v3723_v45 = vpop.f32.mrb[69].mxu0 }
 0x399   :  { %v3724_v13 = vadd.f32 %v3723_v45, %v3722_v20  ;;  %v3725_v47 = vpop.f32.mrb[70].mxu0 }
 0x39a   :  { %3195 = vst [vmem:[#allocation11 + $0x18] sm:$0xff] %v3181_v10  ;;  %v3756_v50 = vpop.f32.mrb[68].mxu1  ;;  %v3726_v44 = vpop.f32.mrb[71].mxu0 }
 0x39b   :  { %v3129_v58 = vadd.f32 %v3724_v13, %v3072_v35  ;;  %v3727_v31 = vadd.f32 %v3726_v44, %v3725_v47  ;;  %v3757_v33 = vpop.f32.mrb[69].mxu1 }
 0x39c   :  { %v3758_v48 = vadd.f32 %v3757_v33, %v3756_v50  ;;  %v3759_v28 = vpop.f32.mrb[70].mxu1 }
 0x39d   :  { %v3132_v51 = vadd.f32 %v3727_v31, %v3075_v49  ;;  %v3760_v0 = vpop.f32.mrb[71].mxu1 }
 0x39e   :  { %v3186_v22 = vadd.f32 %v3758_v48, %v3129_v58  ;;  %v3761_v38 = vadd.f32 %v3760_v0, %v3759_v28 }
 0x3a0   :  { %3196 = vst [vmem:[#allocation11 + $0x20] sm:$0xff] %v3186_v22  ;;  %v3189_v24 = vadd.f32 %v3761_v38, %v3132_v51 }
 0x3a2   :  { %3197 = vst [vmem:[#allocation11 + $0x28] sm:$0xff] %v3189_v24 }
 0x3a3   :  { %4108 = shalt.err (!%p4105_p8)
}
 0x3a4   :  { %s4109_s9 = scalar_lea.hbm %s4756_s6, 768 }
 0x3a5   :  { %p4110_p9 = scmp.ne.s32.totalorder %s4756_s6, %s4109_s9  ;;  %p4113_p10 = scmp.lt.u32.totalorder %s4109_s9, %s4756_s6 }
 0x3a7   :  { %p4115_p11 = pnand %p4113_p10, %p4110_p9 }
 0x3a9   :  { %4118 = shalt.err (!%p4115_p11)
}
 0x3aa   :  { %3209 = dma.vmem_to_hbm [thread:$0]  %s3204_s27, 768, %s4756_s6, [#allocation5], %s4128_s7, %s4128_s7, %s4129_s8  }
 0x3ab   :  { %4125 = dma.done.wait [#allocation5], 768  }
 0x3ac   :  { %4126 = vsyncadd [#allocation5], 4294966528 }
 0x3ad   :  { %3213 = vsyncpa [#allocation4], 1 }
 0x3ae   :  { %3214 = vsyncpa [#allocation7], 1 }
 0x3af   :  { %3215 = vsyncpa [#allocation10], 1 }
 0x3b0   :  { %3216 = vsyncpa [#allocation5], 1 }

</bundles_post_ra>
